<compile_context>
chip_gen: v7x
topology: tpu7x:2x2x1
jax: 0.10.0
libtpu: 0.0.40
codegen_flags: <defaults>
</compile_context>

<pallas_src>
import jax
import jax.numpy as jnp
from jax import lax
from jax.experimental import pallas as pl
from jax.experimental.pallas import tpu as pltpu


# ----------------------------- fused Pallas kernel ---------------------------

def _make_fused_kernel(Ho1, Wo1, Ho2, Wo2, Ho3, Wo3):
    """Shape-specialized fused forward kernel.

    conv1's output (Ho1 x Wo1 x 64) is kept in VMEM grouped by (row, col)
    parity: 4 planes of Hpe x Wpe positions (zero-padded), so every stride-2
    conv2 tap is a contiguous unit-stride row range of the scratch.
    """
    Hpe, Wpe = (Ho1 + 1) // 2, (Wo1 + 1) // 2
    plane = Hpe * Wpe
    M1 = 4 * plane            # conv1 rows (parity-plane padded)
    M2 = Ho2 * Wo2            # conv2 output positions
    P3 = Ho3 * Wo3            # conv3 output positions

    def kernel(patches_ref, w1_ref, b1_ref, w2_ref, b2_ref, w3_ref, b3_ref,
               wl_ref, bl_ref, out_ref, x1_ref, x2_ref):
        # ---- conv1: (M1, 9) @ (9, 64) + bias, ReLU; result stays in VMEM ----
        y1 = jnp.dot(patches_ref[0], w1_ref[...],
                     preferred_element_type=jnp.float32)
        x1_ref[...] = jnp.maximum(y1 + b1_ref[...], 0.0)

        # ---- conv2: 9 taps, each a unit-stride VMEM gather + MXU matmul -----
        acc2 = jnp.zeros((M2, 64), jnp.float32)
        for kh in range(3):
            for kw in range(3):
                q = (kh % 2) * 2 + (kw % 2)                    # parity plane
                base = q * plane + (kh // 2) * Wpe + (kw // 2)
                x_tap = jnp.concatenate(
                    [x1_ref[pl.ds(base + i * Wpe, Wo2), :] for i in range(Ho2)],
                    axis=0)                                    # (M2, 64)
                acc2 = acc2 + jnp.dot(x_tap, w2_ref[kh * 3 + kw],
                                      preferred_element_type=jnp.float32)
        x2_ref[...] = jnp.maximum(acc2 + b2_ref[...], 0.0)

        # ---- conv3: tiny output -> per-position row gather + 9 matmuls ------
        acc3 = jnp.zeros((P3, 64), jnp.float32)
        for kh in range(3):
            for kw in range(3):
                x_tap = jnp.concatenate(
                    [x2_ref[pl.ds((2 * ho + kh) * Wo2 + 2 * wo + kw, 1), :]
                     for ho in range(Ho3) for wo in range(Wo3)],
                    axis=0)                                    # (P3, 64)
                acc3 = acc3 + jnp.dot(x_tap, w3_ref[kh * 3 + kw],
                                      preferred_element_type=jnp.float32)
        y3 = jnp.maximum(acc3 + b3_ref[...], 0.0)              # (P3, 64)

        # ---- Linear: lane-dense VPU multiply + reduce, stable sigmoid -------
        z = jnp.sum(y3 * wl_ref[...], axis=1, keepdims=True)   # (P3, 1)
        z = jnp.sum(z, axis=0, keepdims=True) + bl_ref[...]    # (1, 1)
        neg = z < 0.0
        e = jnp.exp(jnp.where(neg, z, -z))                     # exp of <= 0
        out_ref[0] = jnp.where(neg, e / (1.0 + e), 1.0 / (1.0 + e))

    return kernel, M1, M2, P3


# ----------------------------- JAX-side glue ----------------------------------

def _conv1_parity_patches(x, Ho1, Wo1):
    """im2col for conv1 (Cin=1), rows grouped by output (row, col) parity.

    x: (N, H, W) f32.  Returns (N, 4*Hpe*Wpe, 9): 4 parity planes each
    zero-padded to Hpe x Wpe positions, 9 = 3x3 taps (kh-major) on the lanes.
    Cheap glue on the single-channel input; the 64-channel layers never
    materialize an im2col matrix in HBM (their taps are gathered in-kernel).
    """
    N = x.shape[0]
    Hpe, Wpe = (Ho1 + 1) // 2, (Wo1 + 1) // 2
    taps = [x[:, kh::2, kw::2][:, :Ho1, :Wo1]
            for kh in range(3) for kw in range(3)]
    t = jnp.stack(taps, axis=-1)                               # (N, Ho1, Wo1, 9)
    planes = []
    for ph in range(2):
        for pw in range(2):
            p = t[:, ph::2, pw::2, :]                          # (N, Hp, Wp, 9)
            p = jnp.pad(p, ((0, 0), (0, Hpe - p.shape[1]),
                            (0, Wpe - p.shape[2]), (0, 0)))
            planes.append(p.reshape(N, Hpe * Wpe, 9))
    return jnp.concatenate(planes, axis=1)                     # (N, 4*Hpe*Wpe, 9)


def discriminator_forward(spec, params):
    bs, topk, L, Fr = spec.shape
    N = bs * topk
    x = spec.reshape(N, L, Fr)                                 # 1 input channel
    Ho1, Wo1 = (L - 3) // 2 + 1, (Fr - 3) // 2 + 1
    Ho2, Wo2 = (Ho1 - 3) // 2 + 1, (Wo1 - 3) // 2 + 1
    Ho3, Wo3 = (Ho2 - 3) // 2 + 1, (Wo2 - 3) // 2 + 1

    patches = _conv1_parity_patches(x, Ho1, Wo1)
    kernel, M1, M2, P3 = _make_fused_kernel(Ho1, Wo1, Ho2, Wo2, Ho3, Wo3)

    out = pl.pallas_call(
        kernel,
        out_shape=jax.ShapeDtypeStruct((N, 1, 1), jnp.float32),
        grid_spec=pltpu.PrefetchScalarGridSpec(
            num_scalar_prefetch=0,
            grid=(N,),
            in_specs=[
                pl.BlockSpec((1, M1, 9), lambda n: (n, 0, 0)),   # conv1 patches
                pl.BlockSpec((9, 64), lambda n: (0, 0)),         # w1
                pl.BlockSpec((1, 64), lambda n: (0, 0)),         # b1
                pl.BlockSpec((9, 64, 64), lambda n: (0, 0, 0)),  # w2
                pl.BlockSpec((1, 64), lambda n: (0, 0)),         # b2
                pl.BlockSpec((9, 64, 64), lambda n: (0, 0, 0)),  # w3
                pl.BlockSpec((1, 64), lambda n: (0, 0)),         # b3
                pl.BlockSpec((P3, 64), lambda n: (0, 0)),        # linear weight
                pl.BlockSpec((1, 1), lambda n: (0, 0)),          # linear bias
            ],
            out_specs=pl.BlockSpec((1, 1, 1), lambda n: (n, 0, 0)),
            scratch_shapes=[
                pltpu.VMEM((M1, 64), jnp.float32),   # conv1 activations
                pltpu.VMEM((M2, 64), jnp.float32),   # conv2 activations
            ],
        ),
        compiler_params=pltpu.CompilerParams(
            dimension_semantics=("parallel",)),   # v7x: both TCs get images
    )(patches, params["w1"], params["b1"], params["w2"], params["b2"],
      params["w3"], params["b3"], params["wl"], params["bl"])
    return out.reshape(N, 1)


# ----------------------------- params / reference -----------------------------

def init_params(key, in_features):
    """PyTorch-default-style uniform(+-1/sqrt(fan_in)) init.

    Weights are stored directly in the kernel layouts: conv weights
    (9, Cin, Cout) with tap = kh*3+kw, biases (1, Cout), and the linear weight
    pre-permuted to (position, channel) = (Ho3*Wo3, 64) so no NCHW-flatten
    transpose is needed at runtime.
    """
    ks = jax.random.split(key, 8)
    P3 = in_features // 64

    def u(k, shape, fan_in):
        b = 1.0 / float(fan_in) ** 0.5
        return jax.random.uniform(k, shape, jnp.float32, -b, b)

    return {
        "w1": u(ks[0], (9, 64), 1 * 9),
        "b1": u(ks[1], (1, 64), 1 * 9),
        "w2": u(ks[2], (9, 64, 64), 64 * 9),
        "b2": u(ks[3], (1, 64), 64 * 9),
        "w3": u(ks[4], (9, 64, 64), 64 * 9),
        "b3": u(ks[5], (1, 64), 64 * 9),
        # NOTE: the original module hardcodes in_features=73920 for its
        # specific spectrogram size; here it is derived from the actual shapes.
        "wl": u(ks[6], (P3, 64), in_features),
        "bl": u(ks[7], (1, 1), in_features),
    }


def _reference_forward(spec, params):
    """Pure-JAX reference (same math, plain XLA ops) for a correctness check."""
    bs, topk, L, Fr = spec.shape
    N = bs * topk
    y = spec.reshape(N, L, Fr, 1)

    def conv(x, w9, b, cin):
        w = w9.reshape(3, 3, cin, 64)
        o = lax.conv_general_dilated(
            x, w, window_strides=(2, 2), padding="VALID",
            dimension_numbers=("NHWC", "HWIO", "NHWC"),
            precision=lax.Precision.HIGHEST)
        return jax.nn.relu(o + b.reshape(1, 1, 1, 64))

    y = conv(y, params["w1"], params["b1"], 1)
    y = conv(y, params["w2"], params["b2"], 64)
    y = conv(y, params["w3"], params["b3"], 64)
    feat = y.reshape(N, -1, 64)                                  # (N, P3, 64)
    z = jnp.sum(feat * params["wl"][None], axis=(1, 2)) + params["bl"][0, 0]
    return jax.nn.sigmoid(z).reshape(N, 1)


# ----------------------------- main -------------------------------------------

if __name__ == "__main__":
    key = jax.random.PRNGKey(0)
    k_in, k_p = jax.random.split(key)

    # small shapes consistent with the module: (bs, topk, len, fre)
    bs, topk, L, Fr = 2, 2, 35, 35
    spec = jax.random.normal(k_in, (bs, topk, L, Fr), jnp.float32)

    def _o(h):
        return (h - 3) // 2 + 1

    H3, W3 = _o(_o(_o(L))), _o(_o(_o(Fr)))
    in_features = 64 * H3 * W3
    params = init_params(k_p, in_features)

    fwd = jax.jit(discriminator_forward)
    score = jax.block_until_ready(fwd(spec, params))

    assert score.shape == (bs * topk, 1)
    assert bool(jnp.all((score > 0.0) & (score < 1.0)))
    ref = _reference_forward(spec, params)
    assert bool(jnp.max(jnp.abs(score - ref)) < 5e-3)
    print("KERNEL_OK")
</pallas_src>

<mosaic_0001>
module attributes {stable_mosaic.version = 11 : i64} {
  func.func @kernel(%arg0: i32, %arg1: memref<1x324x9xf32, #tpu.memory_space<vmem>>, %arg2: memref<9x64xf32, #tpu.memory_space<vmem>>, %arg3: memref<1x64xf32, #tpu.memory_space<vmem>>, %arg4: memref<9x64x64xf32, #tpu.memory_space<vmem>>, %arg5: memref<1x64xf32, #tpu.memory_space<vmem>>, %arg6: memref<9x64x64xf32, #tpu.memory_space<vmem>>, %arg7: memref<1x64xf32, #tpu.memory_space<vmem>>, %arg8: memref<9x64xf32, #tpu.memory_space<vmem>>, %arg9: memref<1x1xf32, #tpu.memory_space<vmem>>, %arg10: memref<1x1x1xf32, #tpu.memory_space<vmem>>, %arg11: memref<324x64xf32, #tpu.memory_space<vmem>>, %arg12: memref<64x64xf32, #tpu.memory_space<vmem>>) attributes {dimension_semantics = [#tpu.dimension_semantics<parallel>], iteration_bounds = array<i64: 4>, scalar_prefetch = 0 : i64, scratch_operands = 2 : i64, tpu.core_type = #tpu.core_type<tc>, window_params = [{transform_indices = @transform_0, window_bounds = array<i64: 1, 324, 9>}, {pipeline_mode = #tpu.pipeline_mode<synchronous>, transform_indices = @transform_1, window_bounds = array<i64: 9, 64>}, {pipeline_mode = #tpu.pipeline_mode<synchronous>, transform_indices = @transform_2, window_bounds = array<i64: 1, 64>}, {pipeline_mode = #tpu.pipeline_mode<synchronous>, transform_indices = @transform_3, window_bounds = array<i64: 9, 64, 64>}, {pipeline_mode = #tpu.pipeline_mode<synchronous>, transform_indices = @transform_4, window_bounds = array<i64: 1, 64>}, {pipeline_mode = #tpu.pipeline_mode<synchronous>, transform_indices = @transform_5, window_bounds = array<i64: 9, 64, 64>}, {pipeline_mode = #tpu.pipeline_mode<synchronous>, transform_indices = @transform_6, window_bounds = array<i64: 1, 64>}, {pipeline_mode = #tpu.pipeline_mode<synchronous>, transform_indices = @transform_7, window_bounds = array<i64: 9, 64>}, {pipeline_mode = #tpu.pipeline_mode<synchronous>, transform_indices = @transform_8, window_bounds = array<i64: 1, 1>}, {transform_indices = @transform_9, window_bounds = array<i64: 1, 1, 1>}]} {
    %c0 = arith.constant 0 : index
    %c0_0 = arith.constant 0 : index
    %c0_1 = arith.constant 0 : index
    %0 = vector.load %arg1[%c0, %c0_0, %c0_1] : memref<1x324x9xf32, #tpu.memory_space<vmem>>, vector<1x324x9xf32>
    %1 = vector.shape_cast %0 : vector<1x324x9xf32> to vector<324x9xf32>
    %c0_2 = arith.constant 0 : index
    %c0_3 = arith.constant 0 : index
    %2 = vector.load %arg2[%c0_2, %c0_3] : memref<9x64xf32, #tpu.memory_space<vmem>>, vector<9x64xf32>
    %cst = arith.constant dense<0.000000e+00> : vector<324x64xf32>
    %3 = tpu.matmul %1, %2, %cst {dimension_numbers = #tpu.dot_dimension_numbers<[1], [0], [0], [1], [0, 0, 1, 1], [], []>} : vector<324x9xf32>, vector<9x64xf32>, vector<324x64xf32> -> vector<324x64xf32>
    %c0_4 = arith.constant 0 : index
    %c0_5 = arith.constant 0 : index
    %4 = vector.load %arg3[%c0_4, %c0_5] : memref<1x64xf32, #tpu.memory_space<vmem>>, vector<1x64xf32>
    %5 = vector.broadcast %4 : vector<1x64xf32> to vector<324x64xf32>
    %6 = arith.addf %3, %5 : vector<324x64xf32>
    %cst_6 = arith.constant 0.000000e+00 : f32
    %7 = vector.broadcast %cst_6 : f32 to vector<324x64xf32>
    %8 = arith.maximumf %6, %7 : vector<324x64xf32>
    %c0_7 = arith.constant 0 : index
    %c0_8 = arith.constant 0 : index
    %9 = vector.load %arg11[%c0_7, %c0_8] : memref<324x64xf32, #tpu.memory_space<vmem>>, vector<324x64xf32>
    tpu.vector_store %arg11[%c0_7, %c0_8], %8 {strides = array<i32>} : memref<324x64xf32, #tpu.memory_space<vmem>>, vector<324x64xf32>,
    %cst_9 = arith.constant 0.000000e+00 : f32
    %10 = vector.broadcast %cst_9 : f32 to vector<64x64xf32>
    %c0_10 = arith.constant 0 : index
    %c0_11 = arith.constant 0 : index
    %11 = vector.load %arg11[%c0_10, %c0_11] : memref<324x64xf32, #tpu.memory_space<vmem>>, vector<8x64xf32>
    %c9 = arith.constant 9 : index
    %c0_12 = arith.constant 0 : index
    %12 = vector.load %arg11[%c9, %c0_12] : memref<324x64xf32, #tpu.memory_space<vmem>>, vector<8x64xf32>
    %c18 = arith.constant 18 : index
    %c0_13 = arith.constant 0 : index
    %13 = vector.load %arg11[%c18, %c0_13] : memref<324x64xf32, #tpu.memory_space<vmem>>, vector<8x64xf32>
    %c27 = arith.constant 27 : index
    %c0_14 = arith.constant 0 : index
    %14 = vector.load %arg11[%c27, %c0_14] : memref<324x64xf32, #tpu.memory_space<vmem>>, vector<8x64xf32>
    %c36 = arith.constant 36 : index
    %c0_15 = arith.constant 0 : index
    %15 = vector.load %arg11[%c36, %c0_15] : memref<324x64xf32, #tpu.memory_space<vmem>>, vector<8x64xf32>
    %c45 = arith.constant 45 : index
    %c0_16 = arith.constant 0 : index
    %16 = vector.load %arg11[%c45, %c0_16] : memref<324x64xf32, #tpu.memory_space<vmem>>, vector<8x64xf32>
    %c54 = arith.constant 54 : index
    %c0_17 = arith.constant 0 : index
    %17 = vector.load %arg11[%c54, %c0_17] : memref<324x64xf32, #tpu.memory_space<vmem>>, vector<8x64xf32>
    %c63 = arith.constant 63 : index
    %c0_18 = arith.constant 0 : index
    %18 = vector.load %arg11[%c63, %c0_18] : memref<324x64xf32, #tpu.memory_space<vmem>>, vector<8x64xf32>
    %19 = tpu.concatenate %11, %12, %13, %14, %15, %16, %17, %18 in 0 : vector<8x64xf32>, vector<8x64xf32>, vector<8x64xf32>, vector<8x64xf32>, vector<8x64xf32>, vector<8x64xf32>, vector<8x64xf32>, vector<8x64xf32> -> vector<64x64xf32>
    %c0_19 = arith.constant 0 : index
    %c0_20 = arith.constant 0 : index
    %c0_21 = arith.constant 0 : index
    %20 = vector.load %arg4[%c0_19, %c0_20, %c0_21] : memref<9x64x64xf32, #tpu.memory_space<vmem>>, vector<1x64x64xf32>
    %21 = vector.shape_cast %20 : vector<1x64x64xf32> to vector<64x64xf32>
    %cst_22 = arith.constant dense<0.000000e+00> : vector<64x64xf32>
    %22 = tpu.matmul %19, %21, %cst_22 {dimension_numbers = #tpu.dot_dimension_numbers<[1], [0], [0], [1], [0, 0, 1, 1], [], []>} : vector<64x64xf32>, vector<64x64xf32>, vector<64x64xf32> -> vector<64x64xf32>
    %23 = arith.addf %10, %22 : vector<64x64xf32>
    %c81 = arith.constant 81 : index
    %c0_23 = arith.constant 0 : index
    %24 = vector.load %arg11[%c81, %c0_23] : memref<324x64xf32, #tpu.memory_space<vmem>>, vector<8x64xf32>
    %c90 = arith.constant 90 : index
    %c0_24 = arith.constant 0 : index
    %25 = vector.load %arg11[%c90, %c0_24] : memref<324x64xf32, #tpu.memory_space<vmem>>, vector<8x64xf32>
    %c99 = arith.constant 99 : index
    %c0_25 = arith.constant 0 : index
    %26 = vector.load %arg11[%c99, %c0_25] : memref<324x64xf32, #tpu.memory_space<vmem>>, vector<8x64xf32>
    %c108 = arith.constant 108 : index
    %c0_26 = arith.constant 0 : index
    %27 = vector.load %arg11[%c108, %c0_26] : memref<324x64xf32, #tpu.memory_space<vmem>>, vector<8x64xf32>
    %c117 = arith.constant 117 : index
    %c0_27 = arith.constant 0 : index
    %28 = vector.load %arg11[%c117, %c0_27] : memref<324x64xf32, #tpu.memory_space<vmem>>, vector<8x64xf32>
    %c126 = arith.constant 126 : index
    %c0_28 = arith.constant 0 : index
    %29 = vector.load %arg11[%c126, %c0_28] : memref<324x64xf32, #tpu.memory_space<vmem>>, vector<8x64xf32>
    %c135 = arith.constant 135 : index
    %c0_29 = arith.constant 0 : index
    %30 = vector.load %arg11[%c135, %c0_29] : memref<324x64xf32, #tpu.memory_space<vmem>>, vector<8x64xf32>
    %c144 = arith.constant 144 : index
    %c0_30 = arith.constant 0 : index
    %31 = vector.load %arg11[%c144, %c0_30] : memref<324x64xf32, #tpu.memory_space<vmem>>, vector<8x64xf32>
    %32 = tpu.concatenate %24, %25, %26, %27, %28, %29, %30, %31 in 0 : vector<8x64xf32>, vector<8x64xf32>, vector<8x64xf32>, vector<8x64xf32>, vector<8x64xf32>, vector<8x64xf32>, vector<8x64xf32>, vector<8x64xf32> -> vector<64x64xf32>
    %c1 = arith.constant 1 : index
    %c0_31 = arith.constant 0 : index
    %c0_32 = arith.constant 0 : index
    %33 = vector.load %arg4[%c1, %c0_31, %c0_32] : memref<9x64x64xf32, #tpu.memory_space<vmem>>, vector<1x64x64xf32>
    %34 = vector.shape_cast %33 : vector<1x64x64xf32> to vector<64x64xf32>
    %cst_33 = arith.constant dense<0.000000e+00> : vector<64x64xf32>
    %35 = tpu.matmul %32, %34, %cst_33 {dimension_numbers = #tpu.dot_dimension_numbers<[1], [0], [0], [1], [0, 0, 1, 1], [], []>} : vector<64x64xf32>, vector<64x64xf32>, vector<64x64xf32> -> vector<64x64xf32>
    %36 = arith.addf %23, %35 : vector<64x64xf32>
    %c1_34 = arith.constant 1 : index
    %c0_35 = arith.constant 0 : index
    %37 = vector.load %arg11[%c1_34, %c0_35] : memref<324x64xf32, #tpu.memory_space<vmem>>, vector<8x64xf32>
    %c10 = arith.constant 10 : index
    %c0_36 = arith.constant 0 : index
    %38 = vector.load %arg11[%c10, %c0_36] : memref<324x64xf32, #tpu.memory_space<vmem>>, vector<8x64xf32>
    %c19 = arith.constant 19 : index
    %c0_37 = arith.constant 0 : index
    %39 = vector.load %arg11[%c19, %c0_37] : memref<324x64xf32, #tpu.memory_space<vmem>>, vector<8x64xf32>
    %c28 = arith.constant 28 : index
    %c0_38 = arith.constant 0 : index
    %40 = vector.load %arg11[%c28, %c0_38] : memref<324x64xf32, #tpu.memory_space<vmem>>, vector<8x64xf32>
    %c37 = arith.constant 37 : index
    %c0_39 = arith.constant 0 : index
    %41 = vector.load %arg11[%c37, %c0_39] : memref<324x64xf32, #tpu.memory_space<vmem>>, vector<8x64xf32>
    %c46 = arith.constant 46 : index
    %c0_40 = arith.constant 0 : index
    %42 = vector.load %arg11[%c46, %c0_40] : memref<324x64xf32, #tpu.memory_space<vmem>>, vector<8x64xf32>
    %c55 = arith.constant 55 : index
    %c0_41 = arith.constant 0 : index
    %43 = vector.load %arg11[%c55, %c0_41] : memref<324x64xf32, #tpu.memory_space<vmem>>, vector<8x64xf32>
    %c64 = arith.constant 64 : index
    %c0_42 = arith.constant 0 : index
    %44 = vector.load %arg11[%c64, %c0_42] : memref<324x64xf32, #tpu.memory_space<vmem>>, vector<8x64xf32>
    %45 = tpu.concatenate %37, %38, %39, %40, %41, %42, %43, %44 in 0 : vector<8x64xf32>, vector<8x64xf32>, vector<8x64xf32>, vector<8x64xf32>, vector<8x64xf32>, vector<8x64xf32>, vector<8x64xf32>, vector<8x64xf32> -> vector<64x64xf32>
    %c2 = arith.constant 2 : index
    %c0_43 = arith.constant 0 : index
    %c0_44 = arith.constant 0 : index
    %46 = vector.load %arg4[%c2, %c0_43, %c0_44] : memref<9x64x64xf32, #tpu.memory_space<vmem>>, vector<1x64x64xf32>
    %47 = vector.shape_cast %46 : vector<1x64x64xf32> to vector<64x64xf32>
    %cst_45 = arith.constant dense<0.000000e+00> : vector<64x64xf32>
    %48 = tpu.matmul %45, %47, %cst_45 {dimension_numbers = #tpu.dot_dimension_numbers<[1], [0], [0], [1], [0, 0, 1, 1], [], []>} : vector<64x64xf32>, vector<64x64xf32>, vector<64x64xf32> -> vector<64x64xf32>
    %49 = arith.addf %36, %48 : vector<64x64xf32>
    %c162 = arith.constant 162 : index
    %c0_46 = arith.constant 0 : index
    %50 = vector.load %arg11[%c162, %c0_46] : memref<324x64xf32, #tpu.memory_space<vmem>>, vector<8x64xf32>
    %c171 = arith.constant 171 : index
    %c0_47 = arith.constant 0 : index
    %51 = vector.load %arg11[%c171, %c0_47] : memref<324x64xf32, #tpu.memory_space<vmem>>, vector<8x64xf32>
    %c180 = arith.constant 180 : index
    %c0_48 = arith.constant 0 : index
    %52 = vector.load %arg11[%c180, %c0_48] : memref<324x64xf32, #tpu.memory_space<vmem>>, vector<8x64xf32>
    %c189 = arith.constant 189 : index
    %c0_49 = arith.constant 0 : index
    %53 = vector.load %arg11[%c189, %c0_49] : memref<324x64xf32, #tpu.memory_space<vmem>>, vector<8x64xf32>
    %c198 = arith.constant 198 : index
    %c0_50 = arith.constant 0 : index
    %54 = vector.load %arg11[%c198, %c0_50] : memref<324x64xf32, #tpu.memory_space<vmem>>, vector<8x64xf32>
    %c207 = arith.constant 207 : index
    %c0_51 = arith.constant 0 : index
    %55 = vector.load %arg11[%c207, %c0_51] : memref<324x64xf32, #tpu.memory_space<vmem>>, vector<8x64xf32>
    %c216 = arith.constant 216 : index
    %c0_52 = arith.constant 0 : index
    %56 = vector.load %arg11[%c216, %c0_52] : memref<324x64xf32, #tpu.memory_space<vmem>>, vector<8x64xf32>
    %c225 = arith.constant 225 : index
    %c0_53 = arith.constant 0 : index
    %57 = vector.load %arg11[%c225, %c0_53] : memref<324x64xf32, #tpu.memory_space<vmem>>, vector<8x64xf32>
    %58 = tpu.concatenate %50, %51, %52, %53, %54, %55, %56, %57 in 0 : vector<8x64xf32>, vector<8x64xf32>, vector<8x64xf32>, vector<8x64xf32>, vector<8x64xf32>, vector<8x64xf32>, vector<8x64xf32>, vector<8x64xf32> -> vector<64x64xf32>
    %c3 = arith.constant 3 : index
    %c0_54 = arith.constant 0 : index
    %c0_55 = arith.constant 0 : index
    %59 = vector.load %arg4[%c3, %c0_54, %c0_55] : memref<9x64x64xf32, #tpu.memory_space<vmem>>, vector<1x64x64xf32>
    %60 = vector.shape_cast %59 : vector<1x64x64xf32> to vector<64x64xf32>
    %cst_56 = arith.constant dense<0.000000e+00> : vector<64x64xf32>
    %61 = tpu.matmul %58, %60, %cst_56 {dimension_numbers = #tpu.dot_dimension_numbers<[1], [0], [0], [1], [0, 0, 1, 1], [], []>} : vector<64x64xf32>, vector<64x64xf32>, vector<64x64xf32> -> vector<64x64xf32>
    %62 = arith.addf %49, %61 : vector<64x64xf32>
    %c243 = arith.constant 243 : index
    %c0_57 = arith.constant 0 : index
    %63 = vector.load %arg11[%c243, %c0_57] : memref<324x64xf32, #tpu.memory_space<vmem>>, vector<8x64xf32>
    %c252 = arith.constant 252 : index
    %c0_58 = arith.constant 0 : index
    %64 = vector.load %arg11[%c252, %c0_58] : memref<324x64xf32, #tpu.memory_space<vmem>>, vector<8x64xf32>
    %c261 = arith.constant 261 : index
    %c0_59 = arith.constant 0 : index
    %65 = vector.load %arg11[%c261, %c0_59] : memref<324x64xf32, #tpu.memory_space<vmem>>, vector<8x64xf32>
    %c270 = arith.constant 270 : index
    %c0_60 = arith.constant 0 : index
    %66 = vector.load %arg11[%c270, %c0_60] : memref<324x64xf32, #tpu.memory_space<vmem>>, vector<8x64xf32>
    %c279 = arith.constant 279 : index
    %c0_61 = arith.constant 0 : index
    %67 = vector.load %arg11[%c279, %c0_61] : memref<324x64xf32, #tpu.memory_space<vmem>>, vector<8x64xf32>
    %c288 = arith.constant 288 : index
    %c0_62 = arith.constant 0 : index
    %68 = vector.load %arg11[%c288, %c0_62] : memref<324x64xf32, #tpu.memory_space<vmem>>, vector<8x64xf32>
    %c297 = arith.constant 297 : index
    %c0_63 = arith.constant 0 : index
    %69 = vector.load %arg11[%c297, %c0_63] : memref<324x64xf32, #tpu.memory_space<vmem>>, vector<8x64xf32>
    %c306 = arith.constant 306 : index
    %c0_64 = arith.constant 0 : index
    %70 = vector.load %arg11[%c306, %c0_64] : memref<324x64xf32, #tpu.memory_space<vmem>>, vector<8x64xf32>
    %71 = tpu.concatenate %63, %64, %65, %66, %67, %68, %69, %70 in 0 : vector<8x64xf32>, vector<8x64xf32>, vector<8x64xf32>, vector<8x64xf32>, vector<8x64xf32>, vector<8x64xf32>, vector<8x64xf32>, vector<8x64xf32> -> vector<64x64xf32>
    %c4 = arith.constant 4 : index
    %c0_65 = arith.constant 0 : index
    %c0_66 = arith.constant 0 : index
    %72 = vector.load %arg4[%c4, %c0_65, %c0_66] : memref<9x64x64xf32, #tpu.memory_space<vmem>>, vector<1x64x64xf32>
    %73 = vector.shape_cast %72 : vector<1x64x64xf32> to vector<64x64xf32>
    %cst_67 = arith.constant dense<0.000000e+00> : vector<64x64xf32>
    %74 = tpu.matmul %71, %73, %cst_67 {dimension_numbers = #tpu.dot_dimension_numbers<[1], [0], [0], [1], [0, 0, 1, 1], [], []>} : vector<64x64xf32>, vector<64x64xf32>, vector<64x64xf32> -> vector<64x64xf32>
    %75 = arith.addf %62, %74 : vector<64x64xf32>
    %c163 = arith.constant 163 : index
    %c0_68 = arith.constant 0 : index
    %76 = vector.load %arg11[%c163, %c0_68] : memref<324x64xf32, #tpu.memory_space<vmem>>, vector<8x64xf32>
    %c172 = arith.constant 172 : index
    %c0_69 = arith.constant 0 : index
    %77 = vector.load %arg11[%c172, %c0_69] : memref<324x64xf32, #tpu.memory_space<vmem>>, vector<8x64xf32>
    %c181 = arith.constant 181 : index
    %c0_70 = arith.constant 0 : index
    %78 = vector.load %arg11[%c181, %c0_70] : memref<324x64xf32, #tpu.memory_space<vmem>>, vector<8x64xf32>
    %c190 = arith.constant 190 : index
    %c0_71 = arith.constant 0 : index
    %79 = vector.load %arg11[%c190, %c0_71] : memref<324x64xf32, #tpu.memory_space<vmem>>, vector<8x64xf32>
    %c199 = arith.constant 199 : index
    %c0_72 = arith.constant 0 : index
    %80 = vector.load %arg11[%c199, %c0_72] : memref<324x64xf32, #tpu.memory_space<vmem>>, vector<8x64xf32>
    %c208 = arith.constant 208 : index
    %c0_73 = arith.constant 0 : index
    %81 = vector.load %arg11[%c208, %c0_73] : memref<324x64xf32, #tpu.memory_space<vmem>>, vector<8x64xf32>
    %c217 = arith.constant 217 : index
    %c0_74 = arith.constant 0 : index
    %82 = vector.load %arg11[%c217, %c0_74] : memref<324x64xf32, #tpu.memory_space<vmem>>, vector<8x64xf32>
    %c226 = arith.constant 226 : index
    %c0_75 = arith.constant 0 : index
    %83 = vector.load %arg11[%c226, %c0_75] : memref<324x64xf32, #tpu.memory_space<vmem>>, vector<8x64xf32>
    %84 = tpu.concatenate %76, %77, %78, %79, %80, %81, %82, %83 in 0 : vector<8x64xf32>, vector<8x64xf32>, vector<8x64xf32>, vector<8x64xf32>, vector<8x64xf32>, vector<8x64xf32>, vector<8x64xf32>, vector<8x64xf32> -> vector<64x64xf32>
    %c5 = arith.constant 5 : index
    %c0_76 = arith.constant 0 : index
    %c0_77 = arith.constant 0 : index
    %85 = vector.load %arg4[%c5, %c0_76, %c0_77] : memref<9x64x64xf32, #tpu.memory_space<vmem>>, vector<1x64x64xf32>
    %86 = vector.shape_cast %85 : vector<1x64x64xf32> to vector<64x64xf32>
    %cst_78 = arith.constant dense<0.000000e+00> : vector<64x64xf32>
    %87 = tpu.matmul %84, %86, %cst_78 {dimension_numbers = #tpu.dot_dimension_numbers<[1], [0], [0], [1], [0, 0, 1, 1], [], []>} : vector<64x64xf32>, vector<64x64xf32>, vector<64x64xf32> -> vector<64x64xf32>
    %88 = arith.addf %75, %87 : vector<64x64xf32>
    %c9_79 = arith.constant 9 : index
    %c0_80 = arith.constant 0 : index
    %89 = vector.load %arg11[%c9_79, %c0_80] : memref<324x64xf32, #tpu.memory_space<vmem>>, vector<8x64xf32>
    %c18_81 = arith.constant 18 : index
    %c0_82 = arith.constant 0 : index
    %90 = vector.load %arg11[%c18_81, %c0_82] : memref<324x64xf32, #tpu.memory_space<vmem>>, vector<8x64xf32>
    %c27_83 = arith.constant 27 : index
    %c0_84 = arith.constant 0 : index
    %91 = vector.load %arg11[%c27_83, %c0_84] : memref<324x64xf32, #tpu.memory_space<vmem>>, vector<8x64xf32>
    %c36_85 = arith.constant 36 : index
    %c0_86 = arith.constant 0 : index
    %92 = vector.load %arg11[%c36_85, %c0_86] : memref<324x64xf32, #tpu.memory_space<vmem>>, vector<8x64xf32>
    %c45_87 = arith.constant 45 : index
    %c0_88 = arith.constant 0 : index
    %93 = vector.load %arg11[%c45_87, %c0_88] : memref<324x64xf32, #tpu.memory_space<vmem>>, vector<8x64xf32>
    %c54_89 = arith.constant 54 : index
    %c0_90 = arith.constant 0 : index
    %94 = vector.load %arg11[%c54_89, %c0_90] : memref<324x64xf32, #tpu.memory_space<vmem>>, vector<8x64xf32>
    %c63_91 = arith.constant 63 : index
    %c0_92 = arith.constant 0 : index
    %95 = vector.load %arg11[%c63_91, %c0_92] : memref<324x64xf32, #tpu.memory_space<vmem>>, vector<8x64xf32>
    %c72 = arith.constant 72 : index
    %c0_93 = arith.constant 0 : index
    %96 = vector.load %arg11[%c72, %c0_93] : memref<324x64xf32, #tpu.memory_space<vmem>>, vector<8x64xf32>
    %97 = tpu.concatenate %89, %90, %91, %92, %93, %94, %95, %96 in 0 : vector<8x64xf32>, vector<8x64xf32>, vector<8x64xf32>, vector<8x64xf32>, vector<8x64xf32>, vector<8x64xf32>, vector<8x64xf32>, vector<8x64xf32> -> vector<64x64xf32>
    %c6 = arith.constant 6 : index
    %c0_94 = arith.constant 0 : index
    %c0_95 = arith.constant 0 : index
    %98 = vector.load %arg4[%c6, %c0_94, %c0_95] : memref<9x64x64xf32, #tpu.memory_space<vmem>>, vector<1x64x64xf32>
    %99 = vector.shape_cast %98 : vector<1x64x64xf32> to vector<64x64xf32>
    %cst_96 = arith.constant dense<0.000000e+00> : vector<64x64xf32>
    %100 = tpu.matmul %97, %99, %cst_96 {dimension_numbers = #tpu.dot_dimension_numbers<[1], [0], [0], [1], [0, 0, 1, 1], [], []>} : vector<64x64xf32>, vector<64x64xf32>, vector<64x64xf32> -> vector<64x64xf32>
    %101 = arith.addf %88, %100 : vector<64x64xf32>
    %c90_97 = arith.constant 90 : index
    %c0_98 = arith.constant 0 : index
    %102 = vector.load %arg11[%c90_97, %c0_98] : memref<324x64xf32, #tpu.memory_space<vmem>>, vector<8x64xf32>
    %c99_99 = arith.constant 99 : index
    %c0_100 = arith.constant 0 : index
    %103 = vector.load %arg11[%c99_99, %c0_100] : memref<324x64xf32, #tpu.memory_space<vmem>>, vector<8x64xf32>
    %c108_101 = arith.constant 108 : index
    %c0_102 = arith.constant 0 : index
    %104 = vector.load %arg11[%c108_101, %c0_102] : memref<324x64xf32, #tpu.memory_space<vmem>>, vector<8x64xf32>
    %c117_103 = arith.constant 117 : index
    %c0_104 = arith.constant 0 : index
    %105 = vector.load %arg11[%c117_103, %c0_104] : memref<324x64xf32, #tpu.memory_space<vmem>>, vector<8x64xf32>
    %c126_105 = arith.constant 126 : index
    %c0_106 = arith.constant 0 : index
    %106 = vector.load %arg11[%c126_105, %c0_106] : memref<324x64xf32, #tpu.memory_space<vmem>>, vector<8x64xf32>
    %c135_107 = arith.constant 135 : index
    %c0_108 = arith.constant 0 : index
    %107 = vector.load %arg11[%c135_107, %c0_108] : memref<324x64xf32, #tpu.memory_space<vmem>>, vector<8x64xf32>
    %c144_109 = arith.constant 144 : index
    %c0_110 = arith.constant 0 : index
    %108 = vector.load %arg11[%c144_109, %c0_110] : memref<324x64xf32, #tpu.memory_space<vmem>>, vector<8x64xf32>
    %c153 = arith.constant 153 : index
    %c0_111 = arith.constant 0 : index
    %109 = vector.load %arg11[%c153, %c0_111] : memref<324x64xf32, #tpu.memory_space<vmem>>, vector<8x64xf32>
    %110 = tpu.concatenate %102, %103, %104, %105, %106, %107, %108, %109 in 0 : vector<8x64xf32>, vector<8x64xf32>, vector<8x64xf32>, vector<8x64xf32>, vector<8x64xf32>, vector<8x64xf32>, vector<8x64xf32>, vector<8x64xf32> -> vector<64x64xf32>
    %c7 = arith.constant 7 : index
    %c0_112 = arith.constant 0 : index
    %c0_113 = arith.constant 0 : index
    %111 = vector.load %arg4[%c7, %c0_112, %c0_113] : memref<9x64x64xf32, #tpu.memory_space<vmem>>, vector<1x64x64xf32>
    %112 = vector.shape_cast %111 : vector<1x64x64xf32> to vector<64x64xf32>
    %cst_114 = arith.constant dense<0.000000e+00> : vector<64x64xf32>
    %113 = tpu.matmul %110, %112, %cst_114 {dimension_numbers = #tpu.dot_dimension_numbers<[1], [0], [0], [1], [0, 0, 1, 1], [], []>} : vector<64x64xf32>, vector<64x64xf32>, vector<64x64xf32> -> vector<64x64xf32>
    %114 = arith.addf %101, %113 : vector<64x64xf32>
    %c10_115 = arith.constant 10 : index
    %c0_116 = arith.constant 0 : index
    %115 = vector.load %arg11[%c10_115, %c0_116] : memref<324x64xf32, #tpu.memory_space<vmem>>, vector<8x64xf32>
    %c19_117 = arith.constant 19 : index
    %c0_118 = arith.constant 0 : index
    %116 = vector.load %arg11[%c19_117, %c0_118] : memref<324x64xf32, #tpu.memory_space<vmem>>, vector<8x64xf32>
    %c28_119 = arith.constant 28 : index
    %c0_120 = arith.constant 0 : index
    %117 = vector.load %arg11[%c28_119, %c0_120] : memref<324x64xf32, #tpu.memory_space<vmem>>, vector<8x64xf32>
    %c37_121 = arith.constant 37 : index
    %c0_122 = arith.constant 0 : index
    %118 = vector.load %arg11[%c37_121, %c0_122] : memref<324x64xf32, #tpu.memory_space<vmem>>, vector<8x64xf32>
    %c46_123 = arith.constant 46 : index
    %c0_124 = arith.constant 0 : index
    %119 = vector.load %arg11[%c46_123, %c0_124] : memref<324x64xf32, #tpu.memory_space<vmem>>, vector<8x64xf32>
    %c55_125 = arith.constant 55 : index
    %c0_126 = arith.constant 0 : index
    %120 = vector.load %arg11[%c55_125, %c0_126] : memref<324x64xf32, #tpu.memory_space<vmem>>, vector<8x64xf32>
    %c64_127 = arith.constant 64 : index
    %c0_128 = arith.constant 0 : index
    %121 = vector.load %arg11[%c64_127, %c0_128] : memref<324x64xf32, #tpu.memory_space<vmem>>, vector<8x64xf32>
    %c73 = arith.constant 73 : index
    %c0_129 = arith.constant 0 : index
    %122 = vector.load %arg11[%c73, %c0_129] : memref<324x64xf32, #tpu.memory_space<vmem>>, vector<8x64xf32>
    %123 = tpu.concatenate %115, %116, %117, %118, %119, %120, %121, %122 in 0 : vector<8x64xf32>, vector<8x64xf32>, vector<8x64xf32>, vector<8x64xf32>, vector<8x64xf32>, vector<8x64xf32>, vector<8x64xf32>, vector<8x64xf32> -> vector<64x64xf32>
    %c8 = arith.constant 8 : index
    %c0_130 = arith.constant 0 : index
    %c0_131 = arith.constant 0 : index
    %124 = vector.load %arg4[%c8, %c0_130, %c0_131] : memref<9x64x64xf32, #tpu.memory_space<vmem>>, vector<1x64x64xf32>
    %125 = vector.shape_cast %124 : vector<1x64x64xf32> to vector<64x64xf32>
    %cst_132 = arith.constant dense<0.000000e+00> : vector<64x64xf32>
    %126 = tpu.matmul %123, %125, %cst_132 {dimension_numbers = #tpu.dot_dimension_numbers<[1], [0], [0], [1], [0, 0, 1, 1], [], []>} : vector<64x64xf32>, vector<64x64xf32>, vector<64x64xf32> -> vector<64x64xf32>
    %127 = arith.addf %114, %126 : vector<64x64xf32>
    %c0_133 = arith.constant 0 : index
    %c0_134 = arith.constant 0 : index
    %128 = vector.load %arg5[%c0_133, %c0_134] : memref<1x64xf32, #tpu.memory_space<vmem>>, vector<1x64xf32>
    %129 = vector.broadcast %128 : vector<1x64xf32> to vector<64x64xf32>
    %130 = arith.addf %127, %129 : vector<64x64xf32>
    %cst_135 = arith.constant 0.000000e+00 : f32
    %131 = vector.broadcast %cst_135 : f32 to vector<64x64xf32>
    %132 = arith.maximumf %130, %131 : vector<64x64xf32>
    %c0_136 = arith.constant 0 : index
    %c0_137 = arith.constant 0 : index
    %133 = vector.load %arg12[%c0_136, %c0_137] : memref<64x64xf32, #tpu.memory_space<vmem>>, vector<64x64xf32>
    tpu.vector_store %arg12[%c0_136, %c0_137], %132 {strides = array<i32>} : memref<64x64xf32, #tpu.memory_space<vmem>>, vector<64x64xf32>,
    %cst_138 = arith.constant 0.000000e+00 : f32
    %134 = vector.broadcast %cst_138 : f32 to vector<9x64xf32>
    %c0_139 = arith.constant 0 : index
    %c0_140 = arith.constant 0 : index
    %135 = vector.load %arg12[%c0_139, %c0_140] : memref<64x64xf32, #tpu.memory_space<vmem>>, vector<1x64xf32>
    %c2_141 = arith.constant 2 : index
    %c0_142 = arith.constant 0 : index
    %136 = vector.load %arg12[%c2_141, %c0_142] : memref<64x64xf32, #tpu.memory_space<vmem>>, vector<1x64xf32>
    %c4_143 = arith.constant 4 : index
    %c0_144 = arith.constant 0 : index
    %137 = vector.load %arg12[%c4_143, %c0_144] : memref<64x64xf32, #tpu.memory_space<vmem>>, vector<1x64xf32>
    %c16 = arith.constant 16 : index
    %c0_145 = arith.constant 0 : index
    %138 = vector.load %arg12[%c16, %c0_145] : memref<64x64xf32, #tpu.memory_space<vmem>>, vector<1x64xf32>
    %c18_146 = arith.constant 18 : index
    %c0_147 = arith.constant 0 : index
    %139 = vector.load %arg12[%c18_146, %c0_147] : memref<64x64xf32, #tpu.memory_space<vmem>>, vector<1x64xf32>
    %c20 = arith.constant 20 : index
    %c0_148 = arith.constant 0 : index
    %140 = vector.load %arg12[%c20, %c0_148] : memref<64x64xf32, #tpu.memory_space<vmem>>, vector<1x64xf32>
    %c32 = arith.constant 32 : index
    %c0_149 = arith.constant 0 : index
    %141 = vector.load %arg12[%c32, %c0_149] : memref<64x64xf32, #tpu.memory_space<vmem>>, vector<1x64xf32>
    %c34 = arith.constant 34 : index
    %c0_150 = arith.constant 0 : index
    %142 = vector.load %arg12[%c34, %c0_150] : memref<64x64xf32, #tpu.memory_space<vmem>>, vector<1x64xf32>
    %c36_151 = arith.constant 36 : index
    %c0_152 = arith.constant 0 : index
    %143 = vector.load %arg12[%c36_151, %c0_152] : memref<64x64xf32, #tpu.memory_space<vmem>>, vector<1x64xf32>
    %144 = tpu.concatenate %135, %136, %137, %138, %139, %140, %141, %142, %143 in 0 : vector<1x64xf32>, vector<1x64xf32>, vector<1x64xf32>, vector<1x64xf32>, vector<1x64xf32>, vector<1x64xf32>, vector<1x64xf32>, vector<1x64xf32>, vector<1x64xf32> -> vector<9x64xf32>
    %c0_153 = arith.constant 0 : index
    %c0_154 = arith.constant 0 : index
    %c0_155 = arith.constant 0 : index
    %145 = vector.load %arg6[%c0_153, %c0_154, %c0_155] : memref<9x64x64xf32, #tpu.memory_space<vmem>>, vector<1x64x64xf32>
    %146 = vector.shape_cast %145 : vector<1x64x64xf32> to vector<64x64xf32>
    %cst_156 = arith.constant dense<0.000000e+00> : vector<9x64xf32>
    %147 = tpu.matmul %144, %146, %cst_156 {dimension_numbers = #tpu.dot_dimension_numbers<[1], [0], [0], [1], [0, 0, 1, 1], [], []>} : vector<9x64xf32>, vector<64x64xf32>, vector<9x64xf32> -> vector<9x64xf32>
    %148 = arith.addf %134, %147 : vector<9x64xf32>
    %c1_157 = arith.constant 1 : index
    %c0_158 = arith.constant 0 : index
    %149 = vector.load %arg12[%c1_157, %c0_158] : memref<64x64xf32, #tpu.memory_space<vmem>>, vector<1x64xf32>
    %c3_159 = arith.constant 3 : index
    %c0_160 = arith.constant 0 : index
    %150 = vector.load %arg12[%c3_159, %c0_160] : memref<64x64xf32, #tpu.memory_space<vmem>>, vector<1x64xf32>
    %c5_161 = arith.constant 5 : index
    %c0_162 = arith.constant 0 : index
    %151 = vector.load %arg12[%c5_161, %c0_162] : memref<64x64xf32, #tpu.memory_space<vmem>>, vector<1x64xf32>
    %c17 = arith.constant 17 : index
    %c0_163 = arith.constant 0 : index
    %152 = vector.load %arg12[%c17, %c0_163] : memref<64x64xf32, #tpu.memory_space<vmem>>, vector<1x64xf32>
    %c19_164 = arith.constant 19 : index
    %c0_165 = arith.constant 0 : index
    %153 = vector.load %arg12[%c19_164, %c0_165] : memref<64x64xf32, #tpu.memory_space<vmem>>, vector<1x64xf32>
    %c21 = arith.constant 21 : index
    %c0_166 = arith.constant 0 : index
    %154 = vector.load %arg12[%c21, %c0_166] : memref<64x64xf32, #tpu.memory_space<vmem>>, vector<1x64xf32>
    %c33 = arith.constant 33 : index
    %c0_167 = arith.constant 0 : index
    %155 = vector.load %arg12[%c33, %c0_167] : memref<64x64xf32, #tpu.memory_space<vmem>>, vector<1x64xf32>
    %c35 = arith.constant 35 : index
    %c0_168 = arith.constant 0 : index
    %156 = vector.load %arg12[%c35, %c0_168] : memref<64x64xf32, #tpu.memory_space<vmem>>, vector<1x64xf32>
    %c37_169 = arith.constant 37 : index
    %c0_170 = arith.constant 0 : index
    %157 = vector.load %arg12[%c37_169, %c0_170] : memref<64x64xf32, #tpu.memory_space<vmem>>, vector<1x64xf32>
    %158 = tpu.concatenate %149, %150, %151, %152, %153, %154, %155, %156, %157 in 0 : vector<1x64xf32>, vector<1x64xf32>, vector<1x64xf32>, vector<1x64xf32>, vector<1x64xf32>, vector<1x64xf32>, vector<1x64xf32>, vector<1x64xf32>, vector<1x64xf32> -> vector<9x64xf32>
    %c1_171 = arith.constant 1 : index
    %c0_172 = arith.constant 0 : index
    %c0_173 = arith.constant 0 : index
    %159 = vector.load %arg6[%c1_171, %c0_172, %c0_173] : memref<9x64x64xf32, #tpu.memory_space<vmem>>, vector<1x64x64xf32>
    %160 = vector.shape_cast %159 : vector<1x64x64xf32> to vector<64x64xf32>
    %cst_174 = arith.constant dense<0.000000e+00> : vector<9x64xf32>
    %161 = tpu.matmul %158, %160, %cst_174 {dimension_numbers = #tpu.dot_dimension_numbers<[1], [0], [0], [1], [0, 0, 1, 1], [], []>} : vector<9x64xf32>, vector<64x64xf32>, vector<9x64xf32> -> vector<9x64xf32>
    %162 = arith.addf %148, %161 : vector<9x64xf32>
    %c2_175 = arith.constant 2 : index
    %c0_176 = arith.constant 0 : index
    %163 = vector.load %arg12[%c2_175, %c0_176] : memref<64x64xf32, #tpu.memory_space<vmem>>, vector<1x64xf32>
    %c4_177 = arith.constant 4 : index
    %c0_178 = arith.constant 0 : index
    %164 = vector.load %arg12[%c4_177, %c0_178] : memref<64x64xf32, #tpu.memory_space<vmem>>, vector<1x64xf32>
    %c6_179 = arith.constant 6 : index
    %c0_180 = arith.constant 0 : index
    %165 = vector.load %arg12[%c6_179, %c0_180] : memref<64x64xf32, #tpu.memory_space<vmem>>, vector<1x64xf32>
    %c18_181 = arith.constant 18 : index
    %c0_182 = arith.constant 0 : index
    %166 = vector.load %arg12[%c18_181, %c0_182] : memref<64x64xf32, #tpu.memory_space<vmem>>, vector<1x64xf32>
    %c20_183 = arith.constant 20 : index
    %c0_184 = arith.constant 0 : index
    %167 = vector.load %arg12[%c20_183, %c0_184] : memref<64x64xf32, #tpu.memory_space<vmem>>, vector<1x64xf32>
    %c22 = arith.constant 22 : index
    %c0_185 = arith.constant 0 : index
    %168 = vector.load %arg12[%c22, %c0_185] : memref<64x64xf32, #tpu.memory_space<vmem>>, vector<1x64xf32>
    %c34_186 = arith.constant 34 : index
    %c0_187 = arith.constant 0 : index
    %169 = vector.load %arg12[%c34_186, %c0_187] : memref<64x64xf32, #tpu.memory_space<vmem>>, vector<1x64xf32>
    %c36_188 = arith.constant 36 : index
    %c0_189 = arith.constant 0 : index
    %170 = vector.load %arg12[%c36_188, %c0_189] : memref<64x64xf32, #tpu.memory_space<vmem>>, vector<1x64xf32>
    %c38 = arith.constant 38 : index
    %c0_190 = arith.constant 0 : index
    %171 = vector.load %arg12[%c38, %c0_190] : memref<64x64xf32, #tpu.memory_space<vmem>>, vector<1x64xf32>
    %172 = tpu.concatenate %163, %164, %165, %166, %167, %168, %169, %170, %171 in 0 : vector<1x64xf32>, vector<1x64xf32>, vector<1x64xf32>, vector<1x64xf32>, vector<1x64xf32>, vector<1x64xf32>, vector<1x64xf32>, vector<1x64xf32>, vector<1x64xf32> -> vector<9x64xf32>
    %c2_191 = arith.constant 2 : index
    %c0_192 = arith.constant 0 : index
    %c0_193 = arith.constant 0 : index
    %173 = vector.load %arg6[%c2_191, %c0_192, %c0_193] : memref<9x64x64xf32, #tpu.memory_space<vmem>>, vector<1x64x64xf32>
    %174 = vector.shape_cast %173 : vector<1x64x64xf32> to vector<64x64xf32>
    %cst_194 = arith.constant dense<0.000000e+00> : vector<9x64xf32>
    %175 = tpu.matmul %172, %174, %cst_194 {dimension_numbers = #tpu.dot_dimension_numbers<[1], [0], [0], [1], [0, 0, 1, 1], [], []>} : vector<9x64xf32>, vector<64x64xf32>, vector<9x64xf32> -> vector<9x64xf32>
    %176 = arith.addf %162, %175 : vector<9x64xf32>
    %c8_195 = arith.constant 8 : index
    %c0_196 = arith.constant 0 : index
    %177 = vector.load %arg12[%c8_195, %c0_196] : memref<64x64xf32, #tpu.memory_space<vmem>>, vector<1x64xf32>
    %c10_197 = arith.constant 10 : index
    %c0_198 = arith.constant 0 : index
    %178 = vector.load %arg12[%c10_197, %c0_198] : memref<64x64xf32, #tpu.memory_space<vmem>>, vector<1x64xf32>
    %c12 = arith.constant 12 : index
    %c0_199 = arith.constant 0 : index
    %179 = vector.load %arg12[%c12, %c0_199] : memref<64x64xf32, #tpu.memory_space<vmem>>, vector<1x64xf32>
    %c24 = arith.constant 24 : index
    %c0_200 = arith.constant 0 : index
    %180 = vector.load %arg12[%c24, %c0_200] : memref<64x64xf32, #tpu.memory_space<vmem>>, vector<1x64xf32>
    %c26 = arith.constant 26 : index
    %c0_201 = arith.constant 0 : index
    %181 = vector.load %arg12[%c26, %c0_201] : memref<64x64xf32, #tpu.memory_space<vmem>>, vector<1x64xf32>
    %c28_202 = arith.constant 28 : index
    %c0_203 = arith.constant 0 : index
    %182 = vector.load %arg12[%c28_202, %c0_203] : memref<64x64xf32, #tpu.memory_space<vmem>>, vector<1x64xf32>
    %c40 = arith.constant 40 : index
    %c0_204 = arith.constant 0 : index
    %183 = vector.load %arg12[%c40, %c0_204] : memref<64x64xf32, #tpu.memory_space<vmem>>, vector<1x64xf32>
    %c42 = arith.constant 42 : index
    %c0_205 = arith.constant 0 : index
    %184 = vector.load %arg12[%c42, %c0_205] : memref<64x64xf32, #tpu.memory_space<vmem>>, vector<1x64xf32>
    %c44 = arith.constant 44 : index
    %c0_206 = arith.constant 0 : index
    %185 = vector.load %arg12[%c44, %c0_206] : memref<64x64xf32, #tpu.memory_space<vmem>>, vector<1x64xf32>
    %186 = tpu.concatenate %177, %178, %179, %180, %181, %182, %183, %184, %185 in 0 : vector<1x64xf32>, vector<1x64xf32>, vector<1x64xf32>, vector<1x64xf32>, vector<1x64xf32>, vector<1x64xf32>, vector<1x64xf32>, vector<1x64xf32>, vector<1x64xf32> -> vector<9x64xf32>
    %c3_207 = arith.constant 3 : index
    %c0_208 = arith.constant 0 : index
    %c0_209 = arith.constant 0 : index
    %187 = vector.load %arg6[%c3_207, %c0_208, %c0_209] : memref<9x64x64xf32, #tpu.memory_space<vmem>>, vector<1x64x64xf32>
    %188 = vector.shape_cast %187 : vector<1x64x64xf32> to vector<64x64xf32>
    %cst_210 = arith.constant dense<0.000000e+00> : vector<9x64xf32>
    %189 = tpu.matmul %186, %188, %cst_210 {dimension_numbers = #tpu.dot_dimension_numbers<[1], [0], [0], [1], [0, 0, 1, 1], [], []>} : vector<9x64xf32>, vector<64x64xf32>, vector<9x64xf32> -> vector<9x64xf32>
    %190 = arith.addf %176, %189 : vector<9x64xf32>
    %c9_211 = arith.constant 9 : index
    %c0_212 = arith.constant 0 : index
    %191 = vector.load %arg12[%c9_211, %c0_212] : memref<64x64xf32, #tpu.memory_space<vmem>>, vector<1x64xf32>
    %c11 = arith.constant 11 : index
    %c0_213 = arith.constant 0 : index
    %192 = vector.load %arg12[%c11, %c0_213] : memref<64x64xf32, #tpu.memory_space<vmem>>, vector<1x64xf32>
    %c13 = arith.constant 13 : index
    %c0_214 = arith.constant 0 : index
    %193 = vector.load %arg12[%c13, %c0_214] : memref<64x64xf32, #tpu.memory_space<vmem>>, vector<1x64xf32>
    %c25 = arith.constant 25 : index
    %c0_215 = arith.constant 0 : index
    %194 = vector.load %arg12[%c25, %c0_215] : memref<64x64xf32, #tpu.memory_space<vmem>>, vector<1x64xf32>
    %c27_216 = arith.constant 27 : index
    %c0_217 = arith.constant 0 : index
    %195 = vector.load %arg12[%c27_216, %c0_217] : memref<64x64xf32, #tpu.memory_space<vmem>>, vector<1x64xf32>
    %c29 = arith.constant 29 : index
    %c0_218 = arith.constant 0 : index
    %196 = vector.load %arg12[%c29, %c0_218] : memref<64x64xf32, #tpu.memory_space<vmem>>, vector<1x64xf32>
    %c41 = arith.constant 41 : index
    %c0_219 = arith.constant 0 : index
    %197 = vector.load %arg12[%c41, %c0_219] : memref<64x64xf32, #tpu.memory_space<vmem>>, vector<1x64xf32>
    %c43 = arith.constant 43 : index
    %c0_220 = arith.constant 0 : index
    %198 = vector.load %arg12[%c43, %c0_220] : memref<64x64xf32, #tpu.memory_space<vmem>>, vector<1x64xf32>
    %c45_221 = arith.constant 45 : index
    %c0_222 = arith.constant 0 : index
    %199 = vector.load %arg12[%c45_221, %c0_222] : memref<64x64xf32, #tpu.memory_space<vmem>>, vector<1x64xf32>
    %200 = tpu.concatenate %191, %192, %193, %194, %195, %196, %197, %198, %199 in 0 : vector<1x64xf32>, vector<1x64xf32>, vector<1x64xf32>, vector<1x64xf32>, vector<1x64xf32>, vector<1x64xf32>, vector<1x64xf32>, vector<1x64xf32>, vector<1x64xf32> -> vector<9x64xf32>
    %c4_223 = arith.constant 4 : index
    %c0_224 = arith.constant 0 : index
    %c0_225 = arith.constant 0 : index
    %201 = vector.load %arg6[%c4_223, %c0_224, %c0_225] : memref<9x64x64xf32, #tpu.memory_space<vmem>>, vector<1x64x64xf32>
    %202 = vector.shape_cast %201 : vector<1x64x64xf32> to vector<64x64xf32>
    %cst_226 = arith.constant dense<0.000000e+00> : vector<9x64xf32>
    %203 = tpu.matmul %200, %202, %cst_226 {dimension_numbers = #tpu.dot_dimension_numbers<[1], [0], [0], [1], [0, 0, 1, 1], [], []>} : vector<9x64xf32>, vector<64x64xf32>, vector<9x64xf32> -> vector<9x64xf32>
    %204 = arith.addf %190, %203 : vector<9x64xf32>
    %c10_227 = arith.constant 10 : index
    %c0_228 = arith.constant 0 : index
    %205 = vector.load %arg12[%c10_227, %c0_228] : memref<64x64xf32, #tpu.memory_space<vmem>>, vector<1x64xf32>
    %c12_229 = arith.constant 12 : index
    %c0_230 = arith.constant 0 : index
    %206 = vector.load %arg12[%c12_229, %c0_230] : memref<64x64xf32, #tpu.memory_space<vmem>>, vector<1x64xf32>
    %c14 = arith.constant 14 : index
    %c0_231 = arith.constant 0 : index
    %207 = vector.load %arg12[%c14, %c0_231] : memref<64x64xf32, #tpu.memory_space<vmem>>, vector<1x64xf32>
    %c26_232 = arith.constant 26 : index
    %c0_233 = arith.constant 0 : index
    %208 = vector.load %arg12[%c26_232, %c0_233] : memref<64x64xf32, #tpu.memory_space<vmem>>, vector<1x64xf32>
    %c28_234 = arith.constant 28 : index
    %c0_235 = arith.constant 0 : index
    %209 = vector.load %arg12[%c28_234, %c0_235] : memref<64x64xf32, #tpu.memory_space<vmem>>, vector<1x64xf32>
    %c30 = arith.constant 30 : index
    %c0_236 = arith.constant 0 : index
    %210 = vector.load %arg12[%c30, %c0_236] : memref<64x64xf32, #tpu.memory_space<vmem>>, vector<1x64xf32>
    %c42_237 = arith.constant 42 : index
    %c0_238 = arith.constant 0 : index
    %211 = vector.load %arg12[%c42_237, %c0_238] : memref<64x64xf32, #tpu.memory_space<vmem>>, vector<1x64xf32>
    %c44_239 = arith.constant 44 : index
    %c0_240 = arith.constant 0 : index
    %212 = vector.load %arg12[%c44_239, %c0_240] : memref<64x64xf32, #tpu.memory_space<vmem>>, vector<1x64xf32>
    %c46_241 = arith.constant 46 : index
    %c0_242 = arith.constant 0 : index
    %213 = vector.load %arg12[%c46_241, %c0_242] : memref<64x64xf32, #tpu.memory_space<vmem>>, vector<1x64xf32>
    %214 = tpu.concatenate %205, %206, %207, %208, %209, %210, %211, %212, %213 in 0 : vector<1x64xf32>, vector<1x64xf32>, vector<1x64xf32>, vector<1x64xf32>, vector<1x64xf32>, vector<1x64xf32>, vector<1x64xf32>, vector<1x64xf32>, vector<1x64xf32> -> vector<9x64xf32>
    %c5_243 = arith.constant 5 : index
    %c0_244 = arith.constant 0 : index
    %c0_245 = arith.constant 0 : index
    %215 = vector.load %arg6[%c5_243, %c0_244, %c0_245] : memref<9x64x64xf32, #tpu.memory_space<vmem>>, vector<1x64x64xf32>
    %216 = vector.shape_cast %215 : vector<1x64x64xf32> to vector<64x64xf32>
    %cst_246 = arith.constant dense<0.000000e+00> : vector<9x64xf32>
    %217 = tpu.matmul %214, %216, %cst_246 {dimension_numbers = #tpu.dot_dimension_numbers<[1], [0], [0], [1], [0, 0, 1, 1], [], []>} : vector<9x64xf32>, vector<64x64xf32>, vector<9x64xf32> -> vector<9x64xf32>
    %218 = arith.addf %204, %217 : vector<9x64xf32>
    %c16_247 = arith.constant 16 : index
    %c0_248 = arith.constant 0 : index
    %219 = vector.load %arg12[%c16_247, %c0_248] : memref<64x64xf32, #tpu.memory_space<vmem>>, vector<1x64xf32>
    %c18_249 = arith.constant 18 : index
    %c0_250 = arith.constant 0 : index
    %220 = vector.load %arg12[%c18_249, %c0_250] : memref<64x64xf32, #tpu.memory_space<vmem>>, vector<1x64xf32>
    %c20_251 = arith.constant 20 : index
    %c0_252 = arith.constant 0 : index
    %221 = vector.load %arg12[%c20_251, %c0_252] : memref<64x64xf32, #tpu.memory_space<vmem>>, vector<1x64xf32>
    %c32_253 = arith.constant 32 : index
    %c0_254 = arith.constant 0 : index
    %222 = vector.load %arg12[%c32_253, %c0_254] : memref<64x64xf32, #tpu.memory_space<vmem>>, vector<1x64xf32>
    %c34_255 = arith.constant 34 : index
    %c0_256 = arith.constant 0 : index
    %223 = vector.load %arg12[%c34_255, %c0_256] : memref<64x64xf32, #tpu.memory_space<vmem>>, vector<1x64xf32>
    %c36_257 = arith.constant 36 : index
    %c0_258 = arith.constant 0 : index
    %224 = vector.load %arg12[%c36_257, %c0_258] : memref<64x64xf32, #tpu.memory_space<vmem>>, vector<1x64xf32>
    %c48 = arith.constant 48 : index
    %c0_259 = arith.constant 0 : index
    %225 = vector.load %arg12[%c48, %c0_259] : memref<64x64xf32, #tpu.memory_space<vmem>>, vector<1x64xf32>
    %c50 = arith.constant 50 : index
    %c0_260 = arith.constant 0 : index
    %226 = vector.load %arg12[%c50, %c0_260] : memref<64x64xf32, #tpu.memory_space<vmem>>, vector<1x64xf32>
    %c52 = arith.constant 52 : index
    %c0_261 = arith.constant 0 : index
    %227 = vector.load %arg12[%c52, %c0_261] : memref<64x64xf32, #tpu.memory_space<vmem>>, vector<1x64xf32>
    %228 = tpu.concatenate %219, %220, %221, %222, %223, %224, %225, %226, %227 in 0 : vector<1x64xf32>, vector<1x64xf32>, vector<1x64xf32>, vector<1x64xf32>, vector<1x64xf32>, vector<1x64xf32>, vector<1x64xf32>, vector<1x64xf32>, vector<1x64xf32> -> vector<9x64xf32>
    %c6_262 = arith.constant 6 : index
    %c0_263 = arith.constant 0 : index
    %c0_264 = arith.constant 0 : index
    %229 = vector.load %arg6[%c6_262, %c0_263, %c0_264] : memref<9x64x64xf32, #tpu.memory_space<vmem>>, vector<1x64x64xf32>
    %230 = vector.shape_cast %229 : vector<1x64x64xf32> to vector<64x64xf32>
    %cst_265 = arith.constant dense<0.000000e+00> : vector<9x64xf32>
    %231 = tpu.matmul %228, %230, %cst_265 {dimension_numbers = #tpu.dot_dimension_numbers<[1], [0], [0], [1], [0, 0, 1, 1], [], []>} : vector<9x64xf32>, vector<64x64xf32>, vector<9x64xf32> -> vector<9x64xf32>
    %232 = arith.addf %218, %231 : vector<9x64xf32>
    %c17_266 = arith.constant 17 : index
    %c0_267 = arith.constant 0 : index
    %233 = vector.load %arg12[%c17_266, %c0_267] : memref<64x64xf32, #tpu.memory_space<vmem>>, vector<1x64xf32>
    %c19_268 = arith.constant 19 : index
    %c0_269 = arith.constant 0 : index
    %234 = vector.load %arg12[%c19_268, %c0_269] : memref<64x64xf32, #tpu.memory_space<vmem>>, vector<1x64xf32>
    %c21_270 = arith.constant 21 : index
    %c0_271 = arith.constant 0 : index
    %235 = vector.load %arg12[%c21_270, %c0_271] : memref<64x64xf32, #tpu.memory_space<vmem>>, vector<1x64xf32>
    %c33_272 = arith.constant 33 : index
    %c0_273 = arith.constant 0 : index
    %236 = vector.load %arg12[%c33_272, %c0_273] : memref<64x64xf32, #tpu.memory_space<vmem>>, vector<1x64xf32>
    %c35_274 = arith.constant 35 : index
    %c0_275 = arith.constant 0 : index
    %237 = vector.load %arg12[%c35_274, %c0_275] : memref<64x64xf32, #tpu.memory_space<vmem>>, vector<1x64xf32>
    %c37_276 = arith.constant 37 : index
    %c0_277 = arith.constant 0 : index
    %238 = vector.load %arg12[%c37_276, %c0_277] : memref<64x64xf32, #tpu.memory_space<vmem>>, vector<1x64xf32>
    %c49 = arith.constant 49 : index
    %c0_278 = arith.constant 0 : index
    %239 = vector.load %arg12[%c49, %c0_278] : memref<64x64xf32, #tpu.memory_space<vmem>>, vector<1x64xf32>
    %c51 = arith.constant 51 : index
    %c0_279 = arith.constant 0 : index
    %240 = vector.load %arg12[%c51, %c0_279] : memref<64x64xf32, #tpu.memory_space<vmem>>, vector<1x64xf32>
    %c53 = arith.constant 53 : index
    %c0_280 = arith.constant 0 : index
    %241 = vector.load %arg12[%c53, %c0_280] : memref<64x64xf32, #tpu.memory_space<vmem>>, vector<1x64xf32>
    %242 = tpu.concatenate %233, %234, %235, %236, %237, %238, %239, %240, %241 in 0 : vector<1x64xf32>, vector<1x64xf32>, vector<1x64xf32>, vector<1x64xf32>, vector<1x64xf32>, vector<1x64xf32>, vector<1x64xf32>, vector<1x64xf32>, vector<1x64xf32> -> vector<9x64xf32>
    %c7_281 = arith.constant 7 : index
    %c0_282 = arith.constant 0 : index
    %c0_283 = arith.constant 0 : index
    %243 = vector.load %arg6[%c7_281, %c0_282, %c0_283] : memref<9x64x64xf32, #tpu.memory_space<vmem>>, vector<1x64x64xf32>
    %244 = vector.shape_cast %243 : vector<1x64x64xf32> to vector<64x64xf32>
    %cst_284 = arith.constant dense<0.000000e+00> : vector<9x64xf32>
    %245 = tpu.matmul %242, %244, %cst_284 {dimension_numbers = #tpu.dot_dimension_numbers<[1], [0], [0], [1], [0, 0, 1, 1], [], []>} : vector<9x64xf32>, vector<64x64xf32>, vector<9x64xf32> -> vector<9x64xf32>
    %246 = arith.addf %232, %245 : vector<9x64xf32>
    %c18_285 = arith.constant 18 : index
    %c0_286 = arith.constant 0 : index
    %247 = vector.load %arg12[%c18_285, %c0_286] : memref<64x64xf32, #tpu.memory_space<vmem>>, vector<1x64xf32>
    %c20_287 = arith.constant 20 : index
    %c0_288 = arith.constant 0 : index
    %248 = vector.load %arg12[%c20_287, %c0_288] : memref<64x64xf32, #tpu.memory_space<vmem>>, vector<1x64xf32>
    %c22_289 = arith.constant 22 : index
    %c0_290 = arith.constant 0 : index
    %249 = vector.load %arg12[%c22_289, %c0_290] : memref<64x64xf32, #tpu.memory_space<vmem>>, vector<1x64xf32>
    %c34_291 = arith.constant 34 : index
    %c0_292 = arith.constant 0 : index
    %250 = vector.load %arg12[%c34_291, %c0_292] : memref<64x64xf32, #tpu.memory_space<vmem>>, vector<1x64xf32>
    %c36_293 = arith.constant 36 : index
    %c0_294 = arith.constant 0 : index
    %251 = vector.load %arg12[%c36_293, %c0_294] : memref<64x64xf32, #tpu.memory_space<vmem>>, vector<1x64xf32>
    %c38_295 = arith.constant 38 : index
    %c0_296 = arith.constant 0 : index
    %252 = vector.load %arg12[%c38_295, %c0_296] : memref<64x64xf32, #tpu.memory_space<vmem>>, vector<1x64xf32>
    %c50_297 = arith.constant 50 : index
    %c0_298 = arith.constant 0 : index
    %253 = vector.load %arg12[%c50_297, %c0_298] : memref<64x64xf32, #tpu.memory_space<vmem>>, vector<1x64xf32>
    %c52_299 = arith.constant 52 : index
    %c0_300 = arith.constant 0 : index
    %254 = vector.load %arg12[%c52_299, %c0_300] : memref<64x64xf32, #tpu.memory_space<vmem>>, vector<1x64xf32>
    %c54_301 = arith.constant 54 : index
    %c0_302 = arith.constant 0 : index
    %255 = vector.load %arg12[%c54_301, %c0_302] : memref<64x64xf32, #tpu.memory_space<vmem>>, vector<1x64xf32>
    %256 = tpu.concatenate %247, %248, %249, %250, %251, %252, %253, %254, %255 in 0 : vector<1x64xf32>, vector<1x64xf32>, vector<1x64xf32>, vector<1x64xf32>, vector<1x64xf32>, vector<1x64xf32>, vector<1x64xf32>, vector<1x64xf32>, vector<1x64xf32> -> vector<9x64xf32>
    %c8_303 = arith.constant 8 : index
    %c0_304 = arith.constant 0 : index
    %c0_305 = arith.constant 0 : index
    %257 = vector.load %arg6[%c8_303, %c0_304, %c0_305] : memref<9x64x64xf32, #tpu.memory_space<vmem>>, vector<1x64x64xf32>
    %258 = vector.shape_cast %257 : vector<1x64x64xf32> to vector<64x64xf32>
    %cst_306 = arith.constant dense<0.000000e+00> : vector<9x64xf32>
    %259 = tpu.matmul %256, %258, %cst_306 {dimension_numbers = #tpu.dot_dimension_numbers<[1], [0], [0], [1], [0, 0, 1, 1], [], []>} : vector<9x64xf32>, vector<64x64xf32>, vector<9x64xf32> -> vector<9x64xf32>
    %260 = arith.addf %246, %259 : vector<9x64xf32>
    %c0_307 = arith.constant 0 : index
    %c0_308 = arith.constant 0 : index
    %261 = vector.load %arg7[%c0_307, %c0_308] : memref<1x64xf32, #tpu.memory_space<vmem>>, vector<1x64xf32>
    %262 = vector.broadcast %261 : vector<1x64xf32> to vector<9x64xf32>
    %263 = arith.addf %260, %262 : vector<9x64xf32>
    %cst_309 = arith.constant 0.000000e+00 : f32
    %264 = vector.broadcast %cst_309 : f32 to vector<9x64xf32>
    %265 = arith.maximumf %263, %264 : vector<9x64xf32>
    %c0_310 = arith.constant 0 : index
    %c0_311 = arith.constant 0 : index
    %266 = vector.load %arg8[%c0_310, %c0_311] : memref<9x64xf32, #tpu.memory_space<vmem>>, vector<9x64xf32>
    %267 = arith.mulf %265, %266 : vector<9x64xf32>
    %cst_312 = arith.constant dense<0.000000e+00> : vector<9xf32>
    %268 = vector.multi_reduction <add>, %267, %cst_312 [1] : vector<9x64xf32> to vector<9xf32>
    %269 = vector.shape_cast %268 : vector<9xf32> to vector<9x1xf32>
    %cst_313 = arith.constant dense<0.000000e+00> : vector<1xf32>
    %270 = vector.multi_reduction <add>, %269, %cst_313 [0] : vector<9x1xf32> to vector<1xf32>
    %271 = vector.shape_cast %270 : vector<1xf32> to vector<1x1xf32>
    %c0_314 = arith.constant 0 : index
    %c0_315 = arith.constant 0 : index
    %272 = vector.load %arg9[%c0_314, %c0_315] : memref<1x1xf32, #tpu.memory_space<vmem>>, vector<1x1xf32>
    %273 = arith.addf %271, %272 : vector<1x1xf32>
    %cst_316 = arith.constant 0.000000e+00 : f32
    %274 = vector.broadcast %cst_316 : f32 to vector<1x1xf32>
    %275 = arith.cmpf olt, %273, %274 : vector<1x1xf32>
    %cst_317 = arith.constant 0.000000e+00 : f32
    %276 = vector.broadcast %cst_317 : f32 to vector<1x1xf32>
    %277 = arith.subf %276, %273 : vector<1x1xf32>
    %278 = arith.select %275, %273, %277 : vector<1x1xi1>, vector<1x1xf32>
    %279 = math.exp %278 : vector<1x1xf32>
    %cst_318 = arith.constant 1.000000e+00 : f32
    %280 = vector.broadcast %cst_318 : f32 to vector<1x1xf32>
    %281 = arith.addf %280, %279 : vector<1x1xf32>
    %282 = arith.divf %279, %281 : vector<1x1xf32>
    %cst_319 = arith.constant 1.000000e+00 : f32
    %283 = vector.broadcast %cst_319 : f32 to vector<1x1xf32>
    %284 = arith.addf %283, %279 : vector<1x1xf32>
    %cst_320 = arith.constant 1.000000e+00 : f32
    %285 = vector.broadcast %cst_320 : f32 to vector<1x1xf32>
    %286 = arith.divf %285, %284 : vector<1x1xf32>
    %287 = arith.select %275, %282, %286 : vector<1x1xi1>, vector<1x1xf32>
    %c0_321 = arith.constant 0 : index
    %c0_322 = arith.constant 0 : index
    %c0_323 = arith.constant 0 : index
    %288 = vector.load %arg10[%c0_321, %c0_322, %c0_323] : memref<1x1x1xf32, #tpu.memory_space<vmem>>, vector<1x1x1xf32>
    %289 = vector.shape_cast %288 : vector<1x1x1xf32> to vector<1x1xf32>
    %290 = vector.shape_cast %287 : vector<1x1xf32> to vector<1x1x1xf32>
    tpu.vector_store %arg10[%c0_321, %c0_322, %c0_323], %290 {strides = array<i32>} : memref<1x1x1xf32, #tpu.memory_space<vmem>>, vector<1x1x1xf32>,
    return
  }
  func.func @transform_0(%arg0: i32) -> (i32, i32, i32) {
    %c0_i32 = arith.constant 0 : i32
    %c0_i32_0 = arith.constant 0 : i32
    %c0_i32_1 = arith.constant 0 : i32
    return %arg0, %c0_i32, %c0_i32_0 : i32, i32, i32
  }
  func.func @transform_1(%arg0: i32) -> (i32, i32) {
    %c0_i32 = arith.constant 0 : i32
    %c0_i32_0 = arith.constant 0 : i32
    %c0_i32_1 = arith.constant 0 : i32
    return %c0_i32, %c0_i32_0 : i32, i32
  }
  func.func @transform_2(%arg0: i32) -> (i32, i32) {
    %c0_i32 = arith.constant 0 : i32
    %c0_i32_0 = arith.constant 0 : i32
    %c0_i32_1 = arith.constant 0 : i32
    return %c0_i32, %c0_i32_0 : i32, i32
  }
  func.func @transform_3(%arg0: i32) -> (i32, i32, i32) {
    %c0_i32 = arith.constant 0 : i32
    %c0_i32_0 = arith.constant 0 : i32
    %c0_i32_1 = arith.constant 0 : i32
    %c0_i32_2 = arith.constant 0 : i32
    return %c0_i32, %c0_i32_0, %c0_i32_1 : i32, i32, i32
  }
  func.func @transform_4(%arg0: i32) -> (i32, i32) {
    %c0_i32 = arith.constant 0 : i32
    %c0_i32_0 = arith.constant 0 : i32
    %c0_i32_1 = arith.constant 0 : i32
    return %c0_i32, %c0_i32_0 : i32, i32
  }
  func.func @transform_5(%arg0: i32) -> (i32, i32, i32) {
    %c0_i32 = arith.constant 0 : i32
    %c0_i32_0 = arith.constant 0 : i32
    %c0_i32_1 = arith.constant 0 : i32
    %c0_i32_2 = arith.constant 0 : i32
    return %c0_i32, %c0_i32_0, %c0_i32_1 : i32, i32, i32
  }
  func.func @transform_6(%arg0: i32) -> (i32, i32) {
    %c0_i32 = arith.constant 0 : i32
    %c0_i32_0 = arith.constant 0 : i32
    %c0_i32_1 = arith.constant 0 : i32
    return %c0_i32, %c0_i32_0 : i32, i32
  }
  func.func @transform_7(%arg0: i32) -> (i32, i32) {
    %c0_i32 = arith.constant 0 : i32
    %c0_i32_0 = arith.constant 0 : i32
    %c0_i32_1 = arith.constant 0 : i32
    return %c0_i32, %c0_i32_0 : i32, i32
  }
  func.func @transform_8(%arg0: i32) -> (i32, i32) {
    %c0_i32 = arith.constant 0 : i32
    %c0_i32_0 = arith.constant 0 : i32
    %c0_i32_1 = arith.constant 0 : i32
    return %c0_i32, %c0_i32_0 : i32, i32
  }
  func.func @transform_9(%arg0: i32) -> (i32, i32, i32) {
    %c0_i32 = arith.constant 0 : i32
    %c0_i32_0 = arith.constant 0 : i32
    %c0_i32_1 = arith.constant 0 : i32
    return %arg0, %c0_i32, %c0_i32_0 : i32, i32, i32
  }
}

</mosaic_0001>

<bundles_post_ra>
// kernel: discriminator_forward.1
= control target key start
LH: loop header
LB: loop body
LE: loop exit
PB: predicated region body
PF: predicated region fallthrough
CT: control target
= control target key end

     0   :  { %s4925_s11 = smov 0   ;;  %s6002_s0 = inlined_call_operand.vmem [shape: f32[4,324,9], index: 0, kind: input, shape index: {}]   ;;  %s6003_s1 = inlined_call_operand.vmem [shape: f32[9,64], index: 1, kind: input, shape index: {}]   ;;  %s6004_s2 = inlined_call_operand.vmem [shape: f32[1,64], index: 2, kind: input, shape index: {}]   ;;  %s6005_s3 = inlined_call_operand.vmem [shape: f32[9,64,64], index: 3, kind: input, shape index: {}]   ;;  %s6006_s4 = inlined_call_operand.vmem [shape: f32[1,64], index: 4, kind: input, shape index: {}]   ;;  %s6007_s5 = inlined_call_operand.vmem [shape: f32[9,64,64], index: 5, kind: input, shape index: {}]   ;;  %s6008_s6 = inlined_call_operand.vmem [shape: f32[1,64], index: 6, kind: input, shape index: {}]   ;;  %s6009_s7 = inlined_call_operand.vmem [shape: f32[9,64], index: 7, kind: input, shape index: {}]   ;;  %s6010_s8 = inlined_call_operand.<no memory space> [shape: f32[1,1], index: 8, kind: input, shape index: {}]   ;;  %s6011_s9 = inlined_call_operand.vmem [shape: f32[4,1,1], index: 9, kind: output, shape index: {}]  }
   0x1   :  { %v14_v0 = vstv %s6010_s8 }
   0x2   :  { %15 = vst [vmem:[#allocation4] sm:$0x1] %v14_v0 }
   0x3 LB: > { %s3373_s12 = sadd.s32 4294967295, %s4866_s11   ;;  %p3377_p0 = scmp.ge.s32.totalorder %s4866_s11, 1  ;;  %s4866_s11 = sphi %s4925_s11, %s21_s11  }
   0x4   : > { %p289_p1 = scmp.lt.s32.totalorder %s4866_s11, 5 }
   0x6   : > { %p290_p2 = pnand %p3377_p0, %p289_p1 }
   0x7   : > { %v372_v1 = vld [vmem:[%s6003_s1] sm:$0xff] (!%p290_p2)  ;;  %v373_v2 = vld [vmem:[%s6003_s1 + $0x8] sm:$0x1] (!%p290_p2)  ;;  %vm505_vm0 = vcmask (!%p290_p2), 1040384   ;;  %v4868_v3 = vmov (!%p290_p2), 0.0|0.0   ;;  %vm4869_vm1 = vmmov (!%p290_p2), 1  }
   0x8   : > { %293 = sbr.rel (%p290_p2) target bundleno = 1221 (0x4c5), region = 56  ;;  %4471 = vmatprep.subr.bf16.mxu0 (!%p290_p2), %v4868_v3  ;;  %v4472_v4 = vpack.c.bf16 (!%p290_p2), %v373_v2, %v372_v1  ;;  %vm4473_vm2 = vmpackc.low (!%p290_p2), %vm505_vm0, %vm4869_vm1  ;;  %p323_p3 = scmp.lt.s32.totalorder (!%p290_p2), %s3373_s12, 3  ;;  %vm4870_vm3 = vmmov (!%p290_p2), 0   ;;  %v4871_v5 = vmov (!%p290_p2), 0.0   ;;  %vm381_vm4 = vcmask (!%p290_p2), 72704   ;;  %v3422_v35 = vld [vmem:[%s6005_s3 + $0x40] sm:$0xff] (!%p290_p2) }
   0x9   : > { %3925 = vmatprep.mubr.msk.f32.mxu0 (!%p290_p2), %vm4870_vm3, %v4871_v5  ;;  %v3423_v36 = vld [vmem:[%s6005_s3 + $0x48] sm:$0xff] (!%p290_p2)  ;;  %v3424_v43 = vld [vmem:[%s6005_s3 + $0x50] sm:$0xff] (!%p290_p2)  ;;  %v3425_v44 = vld [vmem:[%s6005_s3 + $0x58] sm:$0xff] (!%p290_p2)  ;;  %vm820_vm5 = vcmask (!%p290_p2), 523264   ;;  %vm2210_vm6 = vcmask (!%p290_p2), 1041408   ;;  %vm2212_vm7 = vcmask (!%p290_p2), 1042432  }
   0xa   : > { %4474 = vmatpush3.bf16.msk.msra.mxu0 (!%p290_p2), %vm4473_vm2, %v4472_v4  ;;  %v4475_v38 = vpack.c.bf16 (!%p290_p2), %v3423_v36, %v3422_v35  ;;  %v4479_v45 = vpack.c.bf16 (!%p290_p2), %v3425_v44, %v3424_v43  ;;  %v3426_v47 = vld [vmem:[%s6005_s3 + $0x60] sm:$0xff] (!%p290_p2)  ;;  %v3427_v48 = vld [vmem:[%s6005_s3 + $0x68] sm:$0xff] (!%p290_p2)  ;;  %v3428_v51 = vld [vmem:[%s6005_s3 + $0x70] sm:$0xff] (!%p290_p2)  ;;  %vm2214_vm8 = vcmask (!%p290_p2), 1043456   ;;  %vm2216_vm9 = vcmask (!%p290_p2), 1044480  }
   0xb   : > { %v4483_v49 = vpack.c.bf16 (!%p290_p2), %v3427_v48, %v3426_v47  ;;  %v3429_v52 = vld [vmem:[%s6005_s3 + $0x78] sm:$0xff] (!%p290_p2)  ;;  %v871_v58 = vld [vmem:[%s6005_s3] sm:$0xff] (!%p290_p2)  ;;  %v872_v59 = vld [vmem:[%s6005_s3 + $0x8] sm:$0xff] (!%p290_p2)  ;;  %vm2218_vm10 = vcmask (!%p290_p2), 1045504   ;;  %vm2220_vm11 = vcmask (!%p290_p2), 1046528   ;;  %vm3300_vm12 = vcmask (!%p290_p2), 516096  }
   0xc   : > { %4476 = vmatprep.subr.bf16.mxu0 (!%p290_p2), %v4475_v38  ;;  %v4487_v53 = vpack.c.bf16 (!%p290_p2), %v3429_v52, %v3428_v51  ;;  %v5137_v60 = vpack.c.bf16 (!%p290_p2), %v872_v59, %v871_v58  ;;  %v3462_v62 = vld [vmem:[%s6005_s3 + $0xc0] sm:$0xff] (!%p290_p2)  ;;  %v3463_v63 = vld [vmem:[%s6005_s3 + $0xc8] sm:$0xff] (!%p290_p2)  ;;  %v3464_v1 = vld [vmem:[%s6005_s3 + $0xd0] sm:$0xff] (!%p290_p2)  ;;  %vm3324_vm14 = vcmask (!%p290_p2), 0  }
   0xd   : > { %v4523_v0 = vpack.c.bf16 (!%p290_p2), %v3463_v63, %v3462_v62  ;;  %v3465_v2 = vld [vmem:[%s6005_s3 + $0xd8] sm:$0xff] (!%p290_p2)  ;;  %v3466_v4 = vld [vmem:[%s6005_s3 + $0xe0] sm:$0xff] (!%p290_p2) }
   0xe   : > { %v4527_v3 = vpack.c.bf16 (!%p290_p2), %v3465_v2, %v3464_v1 }
   0xf   : > { %s6013_s12 = smov (!%p323_p3, %s3373_s12), 3  ;;  %4524 = vmatprep.subr.bf16.mxu1 %v4523_v0 }
  0x10   : > { %s4843_s16 = smul.u32 328, %s6013_s12  ;;  %4526 = vmatpush3.bf16.msra.mxu1 %v4523_v0  ;;  %s330_s21 = scalar_lea.vmem %s6011_s9, %s6013_s12 }
  0x11   : > { %4528 = vmatprep.subr.bf16.mxu1 %v4527_v3 }
  0x12   : > { %s4948_s19 = scalar_lea.vmem %s6002_s0, %s4843_s16 }
  0x13   : > { %v331_v6 = vld [vmem:[%s4948_s19] sm:$0xff]  ;;  %v332_v7 = vld [vmem:[%s4948_s19 + $0x8] sm:$0xff]  ;;  %v333_v8 = vld [vmem:[%s4948_s19 + $0x10] sm:$0xff] }
  0x14   : > { %3926 = vmatmul.mubr.msk.f32.vlgmr.msra.gmra.mrb[0].mxu0 %vm381_vm4, %v331_v6  ;;  %v334_v9 = vld [vmem:[%s4948_s19 + $0x18] sm:$0xff]  ;;  %v335_v10 = vld [vmem:[%s4948_s19 + $0x20] sm:$0xff]  ;;  %v336_v11 = vld [vmem:[%s4948_s19 + $0x28] sm:$0xff]  ;;  %4530 = vmatpush3.bf16.msra.mxu1 %v4527_v3 }
  0x15   : > { %3928 = vmatprep.mubr.msk.f32.mxu0 %vm4870_vm3, %v4871_v5  ;;  %v337_v12 = vld [vmem:[%s4948_s19 + $0x30] sm:$0xff]  ;;  %v338_v13 = vld [vmem:[%s4948_s19 + $0x38] sm:$0xff]  ;;  %v339_v14 = vld [vmem:[%s4948_s19 + $0x40] sm:$0xff]  ;;  %4478 = vmatpush3.bf16.msra.mxu0 %v4475_v38 }
  0x16   : > { %v340_v15 = vld [vmem:[%s4948_s19 + $0x48] sm:$0xff]  ;;  %v341_v16 = vld [vmem:[%s4948_s19 + $0x50] sm:$0xff]  ;;  %v342_v17 = vld [vmem:[%s4948_s19 + $0x58] sm:$0xff]  ;;  %4480 = vmatprep.subr.bf16.mxu0 %v4479_v45 }
  0x17   : > { %v343_v18 = vld [vmem:[%s4948_s19 + $0x60] sm:$0xff]  ;;  %v344_v19 = vld [vmem:[%s4948_s19 + $0x68] sm:$0xff]  ;;  %v345_v20 = vld [vmem:[%s4948_s19 + $0x70] sm:$0xff] }
  0x18   : > { %3929 = vmatmul.mubr.msk.f32.gmra.mrb[2].mxu0 %vm381_vm4, %v332_v7  ;;  %v346_v21 = vld [vmem:[%s4948_s19 + $0x78] sm:$0xff]  ;;  %v347_v22 = vld [vmem:[%s4948_s19 + $0x80] sm:$0xff]  ;;  %v348_v23 = vld [vmem:[%s4948_s19 + $0x88] sm:$0xff] }
  0x19   : > { %3931 = vmatprep.mubr.msk.f32.mxu0 %vm4870_vm3, %v4871_v5  ;;  %v349_v24 = vld [vmem:[%s4948_s19 + $0x90] sm:$0xff]  ;;  %v350_v25 = vld [vmem:[%s4948_s19 + $0x98] sm:$0xff]  ;;  %v351_v26 = vld [vmem:[%s4948_s19 + $0xa0] sm:$0xff]  ;;  %4482 = vmatpush3.bf16.msra.mxu0 %v4479_v45 }
  0x1a   : > { %v352_v27 = vld [vmem:[%s4948_s19 + $0xa8] sm:$0xff]  ;;  %v353_v28 = vld [vmem:[%s4948_s19 + $0xb0] sm:$0xff]  ;;  %v354_v29 = vld [vmem:[%s4948_s19 + $0xb8] sm:$0xff]  ;;  %4484 = vmatprep.subr.bf16.mxu0 %v4483_v49 }
  0x1b   : > { %v355_v30 = vld [vmem:[%s4948_s19 + $0xc0] sm:$0xff]  ;;  %v356_v31 = vld [vmem:[%s4948_s19 + $0xc8] sm:$0xff]  ;;  %v357_v32 = vld [vmem:[%s4948_s19 + $0xd0] sm:$0xff] }
  0x1c   : > { %3932 = vmatmul.mubr.msk.f32.gmra.mrb[4].mxu0 %vm381_vm4, %v333_v8  ;;  %v358_v33 = vld [vmem:[%s4948_s19 + $0xd8] sm:$0xff]  ;;  %v359_v34 = vld [vmem:[%s4948_s19 + $0xe0] sm:$0xff]  ;;  %v360_v37 = vld [vmem:[%s4948_s19 + $0xe8] sm:$0xff] }
  0x1d   : > { %3934 = vmatprep.mubr.msk.f32.mxu0 %vm4870_vm3, %v4871_v5  ;;  %v361_v39 = vld [vmem:[%s4948_s19 + $0xf0] sm:$0xff]  ;;  %v362_v40 = vld [vmem:[%s4948_s19 + $0xf8] sm:$0xff]  ;;  %v363_v41 = vld [vmem:[%s4948_s19 + $0x100] sm:$0xff]  ;;  %4486 = vmatpush3.bf16.msra.mxu0 %v4483_v49 }
  0x1e   : > { %v364_v42 = vld [vmem:[%s4948_s19 + $0x108] sm:$0xff]  ;;  %v365_v46 = vld [vmem:[%s4948_s19 + $0x110] sm:$0xff]  ;;  %v366_v50 = vld [vmem:[%s4948_s19 + $0x118] sm:$0xff]  ;;  %4488 = vmatprep.subr.bf16.mxu0 %v4487_v53 }
  0x1f   : > { %v367_v54 = vld [vmem:[%s4948_s19 + $0x120] sm:$0xff]  ;;  %v368_v55 = vld [vmem:[%s4948_s19 + $0x128] sm:$0xff]  ;;  %v369_v56 = vld [vmem:[%s4948_s19 + $0x130] sm:$0xff] }
  0x20   : > { %3935 = vmatmul.mubr.msk.f32.gmra.mrb[6].mxu0 %vm381_vm4, %v334_v9  ;;  %v370_v57 = vld [vmem:[%s4948_s19 + $0x138] sm:$0xff]  ;;  %v371_v61 = vld [vmem:[%s4948_s19 + $0x140] sm:$0xf]  ;;  %v3468_v7 = vld [vmem:[%s6005_s3 + $0xf0] sm:$0xff] }
  0x21   : > { %3937 = vmatprep.mubr.msk.f32.mxu0 %vm4870_vm3, %v4871_v5  ;;  %4490 = vmatpush3.bf16.msra.mxu0 %v4487_v53  ;;  %v3469_v8 = vld [vmem:[%s6005_s3 + $0xf8] sm:$0xff] }
  0x22   : > { %4492 = vmatprep.subr.bf16.mxu0 %v5137_v60  ;;  %v4535_v9 = vpack.c.bf16 %v3469_v8, %v3468_v7 }
  0x24   : > { %3938 = vmatmul.mubr.msk.f32.gmra.mrb[8].mxu0 %vm381_vm4, %v335_v10  ;;  %v3478_v10 = vld [vmem:[%s6005_s3 + $0x100] sm:$0xff] }
  0x25   : > { %3940 = vmatprep.mubr.msk.f32.mxu0 %vm4870_vm3, %v4871_v5 }
  0x28   : > { %3941 = vmatmul.mubr.msk.f32.gmra.mrb[10].mxu0 %vm381_vm4, %v336_v11  ;;  %v3479_v11 = vld [vmem:[%s6005_s3 + $0x108] sm:$0xff] }
  0x29   : > { %3943 = vmatprep.mubr.msk.f32.mxu0 %vm4870_vm3, %v4871_v5 }
  0x2c   : > { %3944 = vmatmul.mubr.msk.f32.gmra.mrb[12].mxu0 %vm381_vm4, %v337_v12  ;;  %v5175_v12 = vpack.c.bf16 %v3479_v11, %v3478_v10  ;;  %v874_v10 = vld [vmem:[%s6005_s3 + $0x18] sm:$0xff] }
  0x2d   : > { %3946 = vmatprep.mubr.msk.f32.mxu0 %vm4870_vm3, %v4871_v5 }
  0x30   : > { %3947 = vmatmul.mubr.msk.f32.gmra.mrb[14].mxu0 %vm381_vm4, %v338_v13  ;;  %v5181_v13 = vld [vmem:[%s6004_s2] ss:$0 sm:$0xff] }
  0x31   : > { %3949 = vmatprep.mubr.msk.f32.mxu0 %vm4870_vm3, %v4871_v5 }
  0x34   : > { %3950 = vmatmul.mubr.msk.f32.gmra.mrb[16].mxu0 %vm381_vm4, %v339_v14 }
  0x35   : > { %3952 = vmatprep.mubr.msk.f32.mxu0 %vm4870_vm3, %v4871_v5 }
  0x38   : > { %3953 = vmatmul.mubr.msk.f32.gmra.mrb[18].mxu0 %vm381_vm4, %v340_v15 }
  0x39   : > { %3955 = vmatprep.mubr.msk.f32.mxu0 %vm4870_vm3, %v4871_v5 }
  0x3c   : > { %3956 = vmatmul.mubr.msk.f32.gmra.mrb[20].mxu0 %vm381_vm4, %v341_v16 }
  0x3d   : > { %3958 = vmatprep.mubr.msk.f32.mxu0 %vm4870_vm3, %v4871_v5 }
  0x40   : > { %3959 = vmatmul.mubr.msk.f32.gmra.mrb[22].mxu0 %vm381_vm4, %v342_v17 }
  0x41   : > { %3961 = vmatprep.mubr.msk.f32.mxu0 %vm4870_vm3, %v4871_v5 }
  0x44   : > { %3962 = vmatmul.mubr.msk.f32.gmra.mrb[24].mxu0 %vm381_vm4, %v343_v18 }
  0x45   : > { %3964 = vmatprep.mubr.msk.f32.mxu0 %vm4870_vm3, %v4871_v5 }
  0x48   : > { %3965 = vmatmul.mubr.msk.f32.gmra.mrb[26].mxu0 %vm381_vm4, %v344_v19 }
  0x49   : > { %3967 = vmatprep.mubr.msk.f32.mxu0 %vm4870_vm3, %v4871_v5 }
  0x4c   : > { %3968 = vmatmul.mubr.msk.f32.gmra.mrb[28].mxu0 %vm381_vm4, %v345_v20 }
  0x4d   : > { %3970 = vmatprep.mubr.msk.f32.mxu0 %vm4870_vm3, %v4871_v5 }
  0x50   : > { %3971 = vmatmul.mubr.msk.f32.gmra.mrb[30].mxu0 %vm381_vm4, %v346_v21 }
  0x51   : > { %3973 = vmatprep.mubr.msk.f32.mxu0 %vm4870_vm3, %v4871_v5 }
  0x54   : > { %3974 = vmatmul.mubr.msk.f32.gmra.mrb[32].mxu0 %vm381_vm4, %v347_v22 }
  0x55   : > { %3976 = vmatprep.mubr.msk.f32.mxu0 %vm4870_vm3, %v4871_v5 }
  0x58   : > { %3977 = vmatmul.mubr.msk.f32.gmra.mrb[34].mxu0 %vm381_vm4, %v348_v23 }
  0x59   : > { %3979 = vmatprep.mubr.msk.f32.mxu0 %vm4870_vm3, %v4871_v5 }
  0x5c   : > { %3980 = vmatmul.mubr.msk.f32.gmra.mrb[36].mxu0 %vm381_vm4, %v349_v24 }
  0x5d   : > { %3982 = vmatprep.mubr.msk.f32.mxu0 %vm4870_vm3, %v4871_v5 }
  0x60   : > { %3983 = vmatmul.mubr.msk.f32.gmra.mrb[38].mxu0 %vm381_vm4, %v350_v25 }
  0x61   : > { %3985 = vmatprep.mubr.msk.f32.mxu0 %vm4870_vm3, %v4871_v5 }
  0x64   : > { %3986 = vmatmul.mubr.msk.f32.gmra.mrb[40].mxu0 %vm381_vm4, %v351_v26 }
  0x65   : > { %3988 = vmatprep.mubr.msk.f32.mxu0 %vm4870_vm3, %v4871_v5 }
  0x68   : > { %3989 = vmatmul.mubr.msk.f32.gmra.mrb[42].mxu0 %vm381_vm4, %v352_v27 }
  0x69   : > { %3991 = vmatprep.mubr.msk.f32.mxu0 %vm4870_vm3, %v4871_v5 }
  0x6c   : > { %3992 = vmatmul.mubr.msk.f32.gmra.mrb[44].mxu0 %vm381_vm4, %v353_v28 }
  0x6d   : > { %3994 = vmatprep.mubr.msk.f32.mxu0 %vm4870_vm3, %v4871_v5 }
  0x70   : > { %3995 = vmatmul.mubr.msk.f32.gmra.mrb[46].mxu0 %vm381_vm4, %v354_v29 }
  0x71   : > { %3997 = vmatprep.mubr.msk.f32.mxu0 %vm4870_vm3, %v4871_v5 }
  0x74   : > { %3998 = vmatmul.mubr.msk.f32.gmra.mrb[48].mxu0 %vm381_vm4, %v355_v30 }
  0x75   : > { %4000 = vmatprep.mubr.msk.f32.mxu0 %vm4870_vm3, %v4871_v5 }
  0x78   : > { %4001 = vmatmul.mubr.msk.f32.gmra.mrb[50].mxu0 %vm381_vm4, %v356_v31 }
  0x79   : > { %4003 = vmatprep.mubr.msk.f32.mxu0 %vm4870_vm3, %v4871_v5 }
  0x7c   : > { %4004 = vmatmul.mubr.msk.f32.gmra.mrb[52].mxu0 %vm381_vm4, %v357_v32 }
  0x7d   : > { %4006 = vmatprep.mubr.msk.f32.mxu0 %vm4870_vm3, %v4871_v5 }
  0x80   : > { %4007 = vmatmul.mubr.msk.f32.gmra.mrb[54].mxu0 %vm381_vm4, %v358_v33 }
  0x81   : > { %4009 = vmatprep.mubr.msk.f32.mxu0 %vm4870_vm3, %v4871_v5 }
  0x84   : > { %4010 = vmatmul.mubr.msk.f32.gmra.mrb[56].mxu0 %vm381_vm4, %v359_v34 }
  0x85   : > { %4012 = vmatprep.mubr.msk.f32.mxu0 %vm4870_vm3, %v4871_v5 }
  0x88   : > { %4013 = vmatmul.mubr.msk.f32.gmra.mrb[58].mxu0 %vm381_vm4, %v360_v37 }
  0x89   : > { %4015 = vmatprep.mubr.msk.f32.mxu0 %vm4870_vm3, %v4871_v5 }
  0x8c   : > { %4016 = vmatmul.mubr.msk.f32.gmra.mrb[60].mxu0 %vm381_vm4, %v361_v39 }
  0x8d   : > { %4018 = vmatprep.mubr.msk.f32.mxu0 %vm4870_vm3, %v4871_v5 }
  0x90   : > { %4019 = vmatmul.mubr.msk.f32.gmra.mrb[62].mxu0 %vm381_vm4, %v362_v40 }
  0x91   : > { %4021 = vmatprep.mubr.msk.f32.mxu0 %vm4870_vm3, %v4871_v5 }
  0x94   : > { %4022 = vmatmul.mubr.msk.f32.gmra.mrb[64].mxu0 %vm381_vm4, %v363_v41 }
  0x95   : > { %4024 = vmatprep.mubr.msk.f32.mxu0 %vm4870_vm3, %v4871_v5 }
  0x98   : > { %4025 = vmatmul.mubr.msk.f32.gmra.mrb[66].mxu0 %vm381_vm4, %v364_v42 }
  0x99   : > { %4027 = vmatprep.mubr.msk.f32.mxu0 %vm4870_vm3, %v4871_v5 }
  0x9c   : > { %4028 = vmatmul.mubr.msk.f32.gmra.mrb[68].mxu0 %vm381_vm4, %v365_v46 }
  0x9d   : > { %4030 = vmatprep.mubr.msk.f32.mxu0 %vm4870_vm3, %v4871_v5 }
  0xa0   : > { %4031 = vmatmul.mubr.msk.f32.gmra.mrb[70].mxu0 %vm381_vm4, %v366_v50 }
  0xa1   : > { %4033 = vmatprep.mubr.msk.f32.mxu0 %vm4870_vm3, %v4871_v5 }
  0xa4   : > { %4034 = vmatmul.mubr.msk.f32.gmra.mrb[72].mxu0 %vm381_vm4, %v367_v54 }
  0xa5   : > { %4036 = vmatprep.mubr.msk.f32.mxu0 %vm4870_vm3, %v4871_v5 }
  0xa8   : > { %4037 = vmatmul.mubr.msk.f32.gmra.mrb[74].mxu0 %vm381_vm4, %v368_v55 }
  0xa9   : > { %4039 = vmatprep.mubr.msk.f32.mxu0 %vm4870_vm3, %v4871_v5 }
  0xac   : > { %4040 = vmatmul.mubr.msk.f32.gmra.mrb[76].mxu0 %vm381_vm4, %v369_v56 }
  0xad   : > { %4042 = vmatprep.mubr.msk.f32.mxu0 %vm4870_vm3, %v4871_v5 }
  0xb0   : > { %4043 = vmatmul.mubr.msk.f32.gmra.mrb[78].mxu0 %vm381_vm4, %v370_v57 }
  0xb1   : > { %4045 = vmatprep.mubr.msk.f32.mxu0 %vm4870_vm3, %v4871_v5  ;;  %v3467_v5 = vld [vmem:[%s6005_s3 + $0xe8] sm:$0xff] }
  0xb2   : > { %v4531_v6 = vpack.c.bf16 %v3467_v5, %v3466_v4 }
  0xb4   : > { %4046 = vmatmul.mubr.msk.f32.gmra.mrb[80].mxu0 %vm381_vm4, %v371_v61  ;;  %4532 = vmatprep.subr.bf16.mxu1 %v4531_v6 }
  0xb5   : > { %4534 = vmatpush3.bf16.msra.mxu1 %v4531_v6 }
  0xb6   : > { %4536 = vmatprep.subr.bf16.mxu1 %v4535_v9 }
  0xb9   : > { %4538 = vmatpush3.bf16.msra.mxu1 %v4535_v9  ;;  %v873_v9 = vld [vmem:[%s6005_s3 + $0x10] sm:$0xff] }
  0xba   : > { %4540 = vmatprep.subr.bf16.mxu1 %v5175_v12 }
  0xe7   : > { %v575_v14 = vpop.f32.mrb[0].mxu0 }
  0xe8   : > { %v576_v15 = vadd.f32 %v5181_v13, %v575_v14  ;;  %v3927_v16 = vpop.f32.mrb[1].mxu0 }
  0xe9   : > { %v4495_v16 = vpack.c.bf16 %v874_v10, %v873_v9 }
  0xea   : > { %v779_v17 = vmax.f32 %v576_v15, 0.0 }
  0xeb   : > { %v580_v18 = vpop.f32.mrb[2].mxu0 }
  0xec   : > { %821 = vst.msk [vmem:[#allocation2] sm:$0xff] %vm820_vm5, %v779_v17  ;;  %v581_v19 = vadd.f32 %v5181_v13, %v580_v18  ;;  %v3930_v20 = vpop.f32.mrb[3].mxu0 }
  0xed   : > { %v876_v20 = vld [vmem:[%s6005_s3 + $0x28] sm:$0xff] }
  0xee   : > { %v780_v21 = vmax.f32 %v581_v19, 0.0  ;;  %v875_v19 = vld [vmem:[%s6005_s3 + $0x20] sm:$0xff] }
  0xef   : > { %v585_v22 = vpop.f32.mrb[4].mxu0 }
  0xf0   : > { %822 = vst.msk [vmem:[#allocation2 + $0x8] sm:$0xff] %vm820_vm5, %v780_v21  ;;  %v586_v23 = vadd.f32 %v5181_v13, %v585_v22  ;;  %v3933_v24 = vpop.f32.mrb[5].mxu0 }
  0xf1   : > { %v4499_v24 = vpack.c.bf16 %v876_v20, %v875_v19 }
  0xf2   : > { %v781_v25 = vmax.f32 %v586_v23, 0.0 }
  0xf3   : > { %v590_v26 = vpop.f32.mrb[6].mxu0 }
  0xf4   : > { %823 = vst.msk [vmem:[#allocation2 + $0x10] sm:$0xff] %vm820_vm5, %v781_v25  ;;  %v591_v27 = vadd.f32 %v5181_v13, %v590_v26  ;;  %v3936_v28 = vpop.f32.mrb[7].mxu0 }
  0xf5   : > { %v878_v28 = vld [vmem:[%s6005_s3 + $0x38] sm:$0xff] }
  0xf6   : > { %v782_v29 = vmax.f32 %v591_v27, 0.0  ;;  %v877_v27 = vld [vmem:[%s6005_s3 + $0x30] sm:$0xff] }
  0xf7   : > { %v595_v30 = vpop.f32.mrb[8].mxu0 }
  0xf8   : > { %824 = vst.msk [vmem:[#allocation2 + $0x18] sm:$0xff] %vm820_vm5, %v782_v29  ;;  %v596_v31 = vadd.f32 %v5181_v13, %v595_v30  ;;  %v3939_v32 = vpop.f32.mrb[9].mxu0 }
  0xfa   : > { %v783_v33 = vmax.f32 %v596_v31, 0.0  ;;  %v4503_v31 = vpack.c.bf16 %v878_v28, %v877_v27 }
  0xfb   : > { %v600_v34 = vpop.f32.mrb[10].mxu0 }
  0xfc   : > { %825 = vst.msk [vmem:[#allocation2 + $0x20] sm:$0xff] %vm820_vm5, %v783_v33  ;;  %v601_v35 = vadd.f32 %v5181_v13, %v600_v34  ;;  %v3942_v36 = vpop.f32.mrb[11].mxu0  ;;  %v3446_v34 = vld [vmem:[%s6005_s3 + $0x80] sm:$0xff] }
  0xfe   : > { %v784_v37 = vmax.f32 %v601_v35, 0.0  ;;  %v3447_v35 = vld [vmem:[%s6005_s3 + $0x88] sm:$0xff] }
  0xff   : > { %v605_v38 = vpop.f32.mrb[12].mxu0 }
 0x100   : > { %826 = vst.msk [vmem:[#allocation2 + $0x28] sm:$0xff] %vm820_vm5, %v784_v37  ;;  %v606_v39 = vadd.f32 %v5181_v13, %v605_v38  ;;  %v3945_v40 = vpop.f32.mrb[13].mxu0 }
 0x102   : > { %v785_v41 = vmax.f32 %v606_v39, 0.0  ;;  %v4507_v39 = vpack.c.bf16 %v3447_v35, %v3446_v34 }
 0x103   : > { %v610_v42 = vpop.f32.mrb[14].mxu0 }
 0x104   : > { %827 = vst.msk [vmem:[#allocation2 + $0x30] sm:$0xff] %vm820_vm5, %v785_v41  ;;  %v611_v43 = vadd.f32 %v5181_v13, %v610_v42  ;;  %v3948_v44 = vpop.f32.mrb[15].mxu0 }
 0x106   : > { %v786_v45 = vmax.f32 %v611_v43, 0.0 }
 0x107   : > { %v615_v46 = vpop.f32.mrb[16].mxu0  ;;  %v5315_v19 = vld [vmem:[#allocation2 + $0x24] sm:$0xff] }
 0x108   : > { %828 = vst.msk [vmem:[#allocation2 + $0x38] sm:$0xff] %vm820_vm5, %v786_v45  ;;  %v616_v47 = vadd.f32 %v5181_v13, %v615_v46  ;;  %v3951_v48 = vpop.f32.mrb[17].mxu0 }
 0x10a   : > { %v787_v49 = vmax.f32 %v616_v47, 0.0 }
 0x10b   : > { %v620_v50 = vpop.f32.mrb[18].mxu0 }
 0x10c   : > { %829 = vst.msk [vmem:[#allocation2 + $0x40] sm:$0xff] %vm820_vm5, %v787_v49  ;;  %v621_v51 = vadd.f32 %v5181_v13, %v620_v50  ;;  %v3954_v52 = vpop.f32.mrb[19].mxu0 }
 0x10e   : > { %v788_v53 = vmax.f32 %v621_v51, 0.0 }
 0x10f   : > { %v625_v54 = vpop.f32.mrb[20].mxu0  ;;  %v5326_v28 = vld [vmem:[#allocation2 + $0x36] sm:$0xff] }
 0x110   : > { %830 = vst.msk [vmem:[#allocation2 + $0x48] sm:$0xff] %vm820_vm5, %v788_v53  ;;  %v626_v55 = vadd.f32 %v5181_v13, %v625_v54  ;;  %v3957_v56 = vpop.f32.mrb[21].mxu0 }
 0x112   : > { %v789_v57 = vmax.f32 %v626_v55, 0.0 }
 0x113   : > { %v630_v58 = vpop.f32.mrb[22].mxu0 }
 0x114   : > { %831 = vst.msk [vmem:[#allocation2 + $0x50] sm:$0xff] %vm820_vm5, %v789_v57  ;;  %v631_v59 = vadd.f32 %v5181_v13, %v630_v58  ;;  %v3960_v61 = vpop.f32.mrb[23].mxu0  ;;  %v3448_v57 = vld [vmem:[%s6005_s3 + $0x90] sm:$0xff]  ;;  %v3449_v58 = vld [vmem:[%s6005_s3 + $0x98] sm:$0xff] }
 0x116   : > { %v790_v62 = vmax.f32 %v631_v59, 0.0 }
 0x117   : > { %v635_v63 = vpop.f32.mrb[24].mxu0 }
 0x118   : > { %832 = vst.msk [vmem:[#allocation2 + $0x58] sm:$0xff] %vm820_vm5, %v790_v62  ;;  %v636_v0 = vadd.f32 %v5181_v13, %v635_v63  ;;  %v3963_v1 = vpop.f32.mrb[25].mxu0  ;;  %v863_v62 = vld [vmem:[#allocation2] sm:$0xff] }
 0x11a   : > { %v791_v2 = vmax.f32 %v636_v0, 0.0  ;;  %v4511_v0 = vpack.c.bf16 %v3449_v58, %v3448_v57 }
 0x11b   : > { %v640_v3 = vpop.f32.mrb[26].mxu0 }
 0x11c   : > { %833 = vst.msk [vmem:[#allocation2 + $0x60] sm:$0xff] %vm820_vm5, %v791_v2  ;;  %v641_v4 = vadd.f32 %v5181_v13, %v640_v3  ;;  %v3966_v5 = vpop.f32.mrb[27].mxu0  ;;  %v5287_v2 = vld [vmem:[#allocation2 + $0x9] sm:$0xff]  ;;  %v3450_v3 = vld [vmem:[%s6005_s3 + $0xa0] sm:$0xff] }
 0x11e   : > { %v792_v6 = vmax.f32 %v641_v4, 0.0  ;;  %v3451_v4 = vld [vmem:[%s6005_s3 + $0xa8] sm:$0xff] }
 0x11f   : > { %v645_v7 = vpop.f32.mrb[28].mxu0  ;;  %v879_v8 = vld [vmem:[#allocation2 + $0x51] sm:$0xff]  ;;  %v4515_v9 = vpack.c.bf16 %v3451_v4, %v3450_v3 }
 0x120   : > { %834 = vst.msk [vmem:[#allocation2 + $0x68] sm:$0xff] %vm820_vm5, %v792_v6  ;;  %v646_v11 = vadd.f32 %v5181_v13, %v645_v7  ;;  %v3969_v14 = vpop.f32.mrb[29].mxu0  ;;  %4064 = vmatprep.mubr.msk.f32.mxu0 %vm820_vm5, %v879_v8  ;;  %v5299_v7 = vld [vmem:[#allocation2 + $0x12] sm:$0xff] }
 0x121   : > { %v3452_v14 = vld [vmem:[%s6005_s3 + $0xb0] sm:$0xff] }
 0x122   : > { %v793_v15 = vmax.f32 %v646_v11, 0.0  ;;  %v5303_v11 = vld [vmem:[#allocation2 + $0x1b] sm:$0xff]  ;;  %v5385_v4 = vld [vmem:[#allocation2 + $0x2e] sm:$0xff] }
 0x123   : > { %v650_v17 = vpop.f32.mrb[30].mxu0  ;;  %v5219_v18 = vld [vmem:[#allocation2 + $0x5a] sm:$0xff] }
 0x124   : > { %835 = vst.msk [vmem:[#allocation2 + $0x70] sm:$0xff] %vm820_vm5, %v793_v15  ;;  %v651_v21 = vadd.f32 %v5181_v13, %v650_v17  ;;  %v3972_v22 = vpop.f32.mrb[31].mxu0  ;;  %4065 = vmatmul.mubr.msk.f32.vlgmr.msra.gmra.mrb[82].mxu0 %vm820_vm5, %v5219_v18  ;;  %v3453_v15 = vld [vmem:[%s6005_s3 + $0xb8] sm:$0xff] }
 0x125   : > { %4494 = vmatpush3.bf16.msra.mxu0 %v5137_v60 }
 0x126   : > { %v794_v23 = vmax.f32 %v651_v21, 0.0  ;;  %4496 = vmatprep.subr.bf16.mxu0 %v4495_v16  ;;  %v4519_v21 = vpack.c.bf16 %v3453_v15, %v3452_v14 }
 0x127   : > { %v655_v25 = vpop.f32.mrb[32].mxu0  ;;  %v5232_v26 = vld [vmem:[#allocation2 + $0x63] sm:$0xff] }
 0x128   : > { %836 = vst.msk [vmem:[#allocation2 + $0x78] sm:$0xff] %vm820_vm5, %v794_v23  ;;  %v656_v29 = vadd.f32 %v5181_v13, %v655_v25  ;;  %v3975_v30 = vpop.f32.mrb[33].mxu0  ;;  %4067 = vmatprep.mubr.msk.f32.mxu0 %vm820_vm5, %v5232_v26  ;;  %v5319_v23 = vld [vmem:[#allocation2 + $0x2d] sm:$0xff] }
 0x129   : > { %4498 = vmatpush3.bf16.msra.mxu0 %v4495_v16  ;;  %v3481_v30 = vld [vmem:[%s6005_s3 + $0x118] sm:$0xff] }
 0x12a   : > { %v795_v60 = vmax.f32 %v656_v29, 0.0  ;;  %4500 = vmatprep.subr.bf16.mxu0 %v4499_v24  ;;  %v3480_v29 = vld [vmem:[%s6005_s3 + $0x110] sm:$0xff] }
 0x12b   : > { %v660_v32 = vpop.f32.mrb[34].mxu0  ;;  %v5244_v33 = vld [vmem:[#allocation2 + $0x6c] sm:$0xff]  ;;  %v4543_v35 = vpack.c.bf16 %v3481_v30, %v3480_v29 }
 0x12c   : > { %837 = vst.msk [vmem:[#allocation2 + $0x80] sm:$0xff] %vm820_vm5, %v795_v60  ;;  %v661_v36 = vadd.f32 %v5181_v13, %v660_v32  ;;  %v3978_v37 = vpop.f32.mrb[35].mxu0  ;;  %4068 = vmatmul.mubr.msk.f32.gmra.mrb[84].mxu0 %vm820_vm5, %v5244_v33  ;;  %v5336_v32 = vld [vmem:[#allocation2 + $0x3f] sm:$0xff] }
 0x12d   : > { %4502 = vmatpush3.bf16.msra.mxu0 %v4499_v24 }
 0x12e   : > { %v796_v38 = vmax.f32 %v661_v36, 0.0  ;;  %4504 = vmatprep.subr.bf16.mxu0 %v4503_v31 }
 0x12f   : > { %v665_v40 = vpop.f32.mrb[36].mxu0  ;;  %v5256_v41 = vld [vmem:[#allocation2 + $0x75] sm:$0xff] }
 0x130   : > { %838 = vst.msk [vmem:[#allocation2 + $0x88] sm:$0xff] %vm820_vm5, %v796_v38  ;;  %v666_v42 = vadd.f32 %v5181_v13, %v665_v40  ;;  %v3981_v43 = vpop.f32.mrb[37].mxu0  ;;  %4070 = vmatprep.mubr.msk.f32.mxu0 %vm820_vm5, %v5256_v41  ;;  %v1154_v38 = vld [vmem:[#allocation2 + $0x1] sm:$0xff] }
 0x131   : > { %4506 = vmatpush3.bf16.msra.mxu0 %v4503_v31  ;;  %v3483_v40 = vld [vmem:[%s6005_s3 + $0x128] sm:$0xff] }
 0x132   : > { %v797_v44 = vmax.f32 %v666_v42, 0.0  ;;  %4508 = vmatprep.subr.bf16.mxu0 %v4507_v39 }
 0x133   : > { %v670_v45 = vpop.f32.mrb[38].mxu0  ;;  %v5262_v46 = vld [vmem:[#allocation2 + $0x7e] sm:$0xff] }
 0x134   : > { %839 = vst.msk [vmem:[#allocation2 + $0x90] sm:$0xff] %vm820_vm5, %v797_v44  ;;  %v671_v47 = vadd.f32 %v5181_v13, %v670_v45  ;;  %v3984_v48 = vpop.f32.mrb[39].mxu0  ;;  %4071 = vmatmul.mubr.msk.f32.gmra.mrb[86].mxu0 %vm820_vm5, %v5262_v46  ;;  %v5351_v44 = vld [vmem:[#allocation2 + $0xa] sm:$0xff] }
 0x136   : > { %v798_v49 = vmax.f32 %v671_v47, 0.0 }
 0x137   : > { %v675_v50 = vpop.f32.mrb[40].mxu0  ;;  %v5268_v51 = vld [vmem:[#allocation2 + $0x87] sm:$0xff] }
 0x138   : > { %840 = vst.msk [vmem:[#allocation2 + $0x98] sm:$0xff] %vm820_vm5, %v798_v49  ;;  %v676_v52 = vadd.f32 %v5181_v13, %v675_v50  ;;  %v3987_v53 = vpop.f32.mrb[41].mxu0  ;;  %4073 = vmatprep.mubr.msk.f32.mxu0 %vm820_vm5, %v5268_v51  ;;  %v5358_v50 = vld [vmem:[#allocation2 + $0x13] sm:$0xff] }
 0x13a   : > { %v799_v54 = vmax.f32 %v676_v52, 0.0  ;;  %v3485_v52 = vld [vmem:[%s6005_s3 + $0x138] sm:$0xff] }
 0x13b   : > { %v680_v55 = vpop.f32.mrb[42].mxu0  ;;  %v5274_v56 = vld [vmem:[#allocation2 + $0x90] sm:$0xff] }
 0x13c   : > { %841 = vst.msk [vmem:[#allocation2 + $0xa0] sm:$0xff] %vm820_vm5, %v799_v54  ;;  %v681_v59 = vadd.f32 %v5181_v13, %v680_v55  ;;  %v3990_v61 = vpop.f32.mrb[43].mxu0  ;;  %4074 = vmatmul.mubr.msk.f32.gmra.mrb[88].mxu0 %vm820_vm5, %v5274_v56  ;;  %v5368_v55 = vld [vmem:[#allocation2 + $0x1c] sm:$0xff] }
 0x13d   : > { %4092 = vmatprep.mubr.msk.f32.mxu0 %vm820_vm5, %v863_v62  ;;  %v5375_v62 = vld [vmem:[#allocation2 + $0x25] sm:$0xff] }
 0x13e   : > { %v800_v63 = vmax.f32 %v681_v59, 0.0 }
 0x13f   : > { %v685_v1 = vpop.f32.mrb[44].mxu0 }
 0x140   : > { %842 = vst.msk [vmem:[#allocation2 + $0xa8] sm:$0xff] %vm820_vm5, %v800_v63  ;;  %v686_v5 = vadd.f32 %v5181_v13, %v685_v1  ;;  %v3993_v6 = vpop.f32.mrb[45].mxu0  ;;  %4093 = vmatmul.mubr.msk.f32.vlgmr.msra.gmra.mrb[82].mxu0 %vm820_vm5, %v5287_v2  ;;  %v3494_v63 = vld [vmem:[%s6005_s3 + $0x140] sm:$0xff] }
 0x141   : > { %4095 = vmatprep.mubr.msk.f32.mxu0 %vm820_vm5, %v5299_v7  ;;  %4510 = vmatpush3.bf16.msra.mxu0 %v4507_v39  ;;  %v3482_v39 = vld [vmem:[%s6005_s3 + $0x120] sm:$0xff] }
 0x142   : > { %v801_v8 = vmax.f32 %v686_v5, 0.0  ;;  %4512 = vmatprep.subr.bf16.mxu0 %v4511_v0  ;;  %v4547_v47 = vpack.c.bf16 %v3483_v40, %v3482_v39 }
 0x143   : > { %v690_v10 = vpop.f32.mrb[46].mxu0 }
 0x144   : > { %843 = vst.msk [vmem:[#allocation2 + $0xb0] sm:$0xff] %vm820_vm5, %v801_v8  ;;  %v691_v16 = vadd.f32 %v5181_v13, %v690_v10  ;;  %v3996_v17 = vpop.f32.mrb[47].mxu0  ;;  %4096 = vmatmul.mubr.msk.f32.gmra.mrb[84].mxu0 %vm820_vm5, %v5303_v11  ;;  %v5392_v10 = vld [vmem:[#allocation2 + $0x37] sm:$0xff] }
 0x145   : > { %4098 = vmatprep.mubr.msk.f32.mxu0 %vm820_vm5, %v5315_v19  ;;  %4514 = vmatpush3.bf16.msra.mxu0 %v4511_v0  ;;  %v3495_v0 = vld [vmem:[%s6005_s3 + $0x148] sm:$0xff] }
 0x146   : > { %v802_v20 = vmax.f32 %v691_v16, 0.0  ;;  %4516 = vmatprep.subr.bf16.mxu0 %v4515_v9  ;;  %v4555_v6 = vpack.c.bf16 %v3495_v0, %v3494_v63  ;;  %v5396_v16 = vld [vmem:[#allocation2 + $0x40] sm:$0xff]  ;;  %v3499_v0 = vld [vmem:[%s6005_s3 + $0x168] sm:$0xff] }
 0x147   : > { %v695_v22 = vpop.f32.mrb[48].mxu0  ;;  %v1308_v24 = vld [vmem:[#allocation2 + $0xa2] sm:$0xff] }
 0x148   : > { %844 = vst.msk [vmem:[#allocation2 + $0xb8] sm:$0xff] %vm820_vm5, %v802_v20  ;;  %v696_v25 = vadd.f32 %v5181_v13, %v695_v22  ;;  %v3999_v27 = vpop.f32.mrb[49].mxu0  ;;  %4099 = vmatmul.mubr.msk.f32.gmra.mrb[86].mxu0 %vm820_vm5, %v5319_v23  ;;  %4148 = vmatprep.mubr.msk.f32.mxu1 %vm820_vm5, %v1308_v24  ;;  %v3498_v63 = vld [vmem:[%s6005_s3 + $0x160] sm:$0xff] }
 0x149   : > { %4101 = vmatprep.mubr.msk.f32.mxu0 %vm820_vm5, %v5326_v28  ;;  %4518 = vmatpush3.bf16.msra.mxu0 %v4515_v9 }
 0x14a   : > { %v803_v60 = vmax.f32 %v696_v25, 0.0  ;;  %4520 = vmatprep.subr.bf16.mxu0 %v4519_v21 }
 0x14b   : > { %v700_v31 = vpop.f32.mrb[50].mxu0  ;;  %v1309_v34 = vld [vmem:[#allocation2 + $0xab] sm:$0xff] }
 0x14c   : > { %845 = vst.msk [vmem:[#allocation2 + $0xc0] sm:$0xff] %vm820_vm5, %v803_v60  ;;  %v701_v36 = vadd.f32 %v5181_v13, %v700_v31  ;;  %v4002_v37 = vpop.f32.mrb[51].mxu0  ;;  %4102 = vmatmul.mubr.msk.f32.gmra.mrb[88].mxu0 %vm820_vm5, %v5336_v32  ;;  %4149 = vmatmul.mubr.msk.f32.vlgmr.msra.gmra.mrb[0].mxu1 %vm820_vm5, %v1309_v34 }
 0x14d   : > { %4522 = vmatpush3.bf16.msra.mxu0 %v4519_v21  ;;  %4120 = vmatprep.mubr.msk.f32.mxu0 %vm820_vm5, %v1154_v38 }
 0x14e   : > { %v804_v42 = vmax.f32 %v701_v36, 0.0  ;;  %4542 = vmatpush3.bf16.msra.mxu1 %v5175_v12  ;;  %v3484_v12 = vld [vmem:[%s6005_s3 + $0x130] sm:$0xff] }
 0x14f   : > { %v705_v43 = vpop.f32.mrb[52].mxu0  ;;  %v1310_v45 = vld [vmem:[#allocation2 + $0xb4] sm:$0xff]  ;;  %4544 = vmatprep.subr.bf16.mxu1 %v4543_v35  ;;  %v4551_v58 = vpack.c.bf16 %v3485_v52, %v3484_v12 }
 0x150   : > { %846 = vst.msk [vmem:[#allocation2 + $0xc8] sm:$0xff] %vm820_vm5, %v804_v42  ;;  %v706_v48 = vadd.f32 %v5181_v13, %v705_v43  ;;  %v4005_v49 = vpop.f32.mrb[53].mxu0  ;;  %4121 = vmatmul.mubr.msk.f32.vlgmr.msra.gmra.mrb[82].mxu0 %vm820_vm5, %v5351_v44  ;;  %4151 = vmatprep.mubr.msk.f32.mxu1 %vm820_vm5, %v1310_v45  ;;  %v3496_v12 = vld [vmem:[%s6005_s3 + $0x150] sm:$0xff]  ;;  %v3497_v52 = vld [vmem:[%s6005_s3 + $0x158] sm:$0xff] }
 0x151   : > { %4123 = vmatprep.mubr.msk.f32.mxu0 %vm820_vm5, %v5358_v50 }
 0x152   : > { %v805_v53 = vmax.f32 %v706_v48, 0.0  ;;  %4546 = vmatpush3.bf16.msra.mxu1 %v4543_v35 }
 0x153   : > { %v710_v54 = vpop.f32.mrb[54].mxu0  ;;  %v1311_v57 = vld [vmem:[#allocation2 + $0xbd] sm:$0xff]  ;;  %4548 = vmatprep.subr.bf16.mxu1 %v4547_v47 }
 0x154   : > { %847 = vst.msk [vmem:[#allocation2 + $0xd0] sm:$0xff] %vm820_vm5, %v805_v53  ;;  %v711_v59 = vadd.f32 %v5181_v13, %v710_v54  ;;  %v4008_v61 = vpop.f32.mrb[55].mxu0  ;;  %4124 = vmatmul.mubr.msk.f32.gmra.mrb[84].mxu0 %vm820_vm5, %v5368_v55  ;;  %4152 = vmatmul.mubr.msk.f32.gmra.mrb[2].mxu1 %vm820_vm5, %v1311_v57 }
 0x155   : > { %4126 = vmatprep.mubr.msk.f32.mxu0 %vm820_vm5, %v5375_v62 }
 0x156   : > { %v806_v1 = vmax.f32 %v711_v59, 0.0  ;;  %4550 = vmatpush3.bf16.msra.mxu1 %v4547_v47 }
 0x157   : > { %v715_v3 = vpop.f32.mrb[56].mxu0  ;;  %v1312_v5 = vld [vmem:[#allocation2 + $0xc6] sm:$0xff]  ;;  %4552 = vmatprep.subr.bf16.mxu1 %v4551_v58 }
 0x158   : > { %848 = vst.msk [vmem:[#allocation2 + $0xd8] sm:$0xff] %vm820_vm5, %v806_v1  ;;  %v716_v8 = vadd.f32 %v5181_v13, %v715_v3  ;;  %v4011_v9 = vpop.f32.mrb[57].mxu0  ;;  %4127 = vmatmul.mubr.msk.f32.gmra.mrb[86].mxu0 %vm820_vm5, %v5385_v4  ;;  %4154 = vmatprep.mubr.msk.f32.mxu1 %vm820_vm5, %v1312_v5 }
 0x159   : > { %4129 = vmatprep.mubr.msk.f32.mxu0 %vm820_vm5, %v5392_v10 }
 0x15a   : > { %v807_v14 = vmax.f32 %v716_v8, 0.0  ;;  %4554 = vmatpush3.bf16.msra.mxu1 %v4551_v58  ;;  %v4559_v58 = vpack.c.bf16 %v3497_v52, %v3496_v12  ;;  %v4563_v8 = vpack.c.bf16 %v3499_v0, %v3498_v63  ;;  %v1618_v63 = vld [vmem:[#allocation2 + $0xb5] sm:$0xff] }
 0x15b   : > { %v720_v15 = vpop.f32.mrb[58].mxu0  ;;  %v1313_v17 = vld [vmem:[#allocation2 + $0xcf] sm:$0xff]  ;;  %4556 = vmatprep.subr.bf16.mxu1 %v4555_v6 }
 0x15c   : > { %849 = vst.msk [vmem:[#allocation2 + $0xe0] sm:$0xff] %vm820_vm5, %v807_v14  ;;  %v721_v20 = vadd.f32 %v5181_v13, %v720_v15  ;;  %v4014_v21 = vpop.f32.mrb[59].mxu0  ;;  %4130 = vmatmul.mubr.msk.f32.gmra.mrb[88].mxu0 %vm820_vm5, %v5396_v16  ;;  %4155 = vmatmul.mubr.msk.f32.gmra.mrb[4].mxu1 %vm820_vm5, %v1313_v17  ;;  %v3500_v15 = vld [vmem:[%s6005_s3 + $0x170] sm:$0xff]  ;;  %v3501_v17 = vld [vmem:[%s6005_s3 + $0x178] sm:$0xff] }
 0x15e   : > { %v808_v22 = vmax.f32 %v721_v20, 0.0 }
 0x15f   : > { %v725_v24 = vpop.f32.mrb[60].mxu0  ;;  %v1314_v25 = vld [vmem:[#allocation2 + $0xd8] sm:$0xff] }
 0x160   : > { %850 = vst.msk [vmem:[#allocation2 + $0xe8] sm:$0xff] %vm820_vm5, %v808_v22  ;;  %v726_v27 = vadd.f32 %v5181_v13, %v725_v24  ;;  %v4017_v29 = vpop.f32.mrb[61].mxu0  ;;  %4157 = vmatprep.mubr.msk.f32.mxu1 %vm820_vm5, %v1314_v25  ;;  %v4567_v22 = vpack.c.bf16 %v3501_v17, %v3500_v15  ;;  %v3526_v15 = vld [vmem:[%s6005_s3 + $0x1c0] sm:$0xff]  ;;  %v3527_v17 = vld [vmem:[%s6005_s3 + $0x1c8] sm:$0xff] }
 0x161   : > { %v3511_v29 = vld [vmem:[%s6005_s3 + $0x188] sm:$0xff] }
 0x162   : > { %v809_v30 = vmax.f32 %v726_v27, 0.0  ;;  %v3510_v27 = vld [vmem:[%s6005_s3 + $0x180] sm:$0xff] }
 0x163   : > { %v730_v60 = vpop.f32.mrb[62].mxu0 }
 0x164   : > { %851 = vst.msk [vmem:[#allocation2 + $0xf0] sm:$0xff] %vm820_vm5, %v809_v30  ;;  %v731_v31 = vadd.f32 %v5181_v13, %v730_v60  ;;  %v4020_v34 = vpop.f32.mrb[63].mxu0 }
 0x165   : > { %v4571_v34 = vpack.c.bf16 %v3511_v29, %v3510_v27  ;;  %v3530_v27 = vld [vmem:[%s6005_s3 + $0x1e0] sm:$0xff]  ;;  %v3531_v29 = vld [vmem:[%s6005_s3 + $0x1e8] sm:$0xff] }
 0x166   : > { %v810_v35 = vmax.f32 %v731_v31, 0.0 }
 0x167   : > { %v735_v36 = vpop.f32.mrb[64].mxu0  ;;  %v1315_v37 = vld [vmem:[#allocation2 + $0xe1] sm:$0xff] }
 0x168   : > { %852 = vst.msk [vmem:[#allocation2 + $0xf8] sm:$0xff] %vm820_vm5, %v810_v35  ;;  %v736_v38 = vadd.f32 %v5181_v13, %v735_v36  ;;  %v4023_v39 = vpop.f32.mrb[65].mxu0  ;;  %4158 = vmatmul.mubr.msk.f32.gmra.mrb[6].mxu1 %vm820_vm5, %v1315_v37 }
 0x16a   : > { %v811_v40 = vmax.f32 %v736_v38, 0.0 }
 0x16b   : > { %v740_v42 = vpop.f32.mrb[66].mxu0 }
 0x16c   : > { %853 = vst.msk [vmem:[#allocation2 + $0x100] sm:$0xff] %vm820_vm5, %v811_v40  ;;  %v741_v43 = vadd.f32 %v5181_v13, %v740_v42  ;;  %v4026_v45 = vpop.f32.mrb[67].mxu0 }
 0x16e   : > { %v812_v47 = vmax.f32 %v741_v43, 0.0 }
 0x16f   : > { %v745_v48 = vpop.f32.mrb[68].mxu0  ;;  %v1462_v49 = vld [vmem:[#allocation2 + $0xf3] sm:$0xff] }
 0x170   : > { %854 = vst.msk [vmem:[#allocation2 + $0x108] sm:$0xff] %vm820_vm5, %v812_v47  ;;  %v746_v53 = vadd.f32 %v5181_v13, %v745_v48  ;;  %v4029_v54 = vpop.f32.mrb[69].mxu0  ;;  %4176 = vmatprep.mubr.msk.f32.mxu1 %vm820_vm5, %v1462_v49 }
 0x171   : > { %v1616_v54 = vld [vmem:[#allocation2 + $0xa3] sm:$0xff] }
 0x172   : > { %v813_v57 = vmax.f32 %v746_v53, 0.0  ;;  %v3512_v53 = vld [vmem:[%s6005_s3 + $0x190] sm:$0xff] }
 0x173   : > { %v750_v59 = vpop.f32.mrb[70].mxu0  ;;  %v1463_v61 = vld [vmem:[#allocation2 + $0xfc] sm:$0xff] }
 0x174   : > { %855 = vst.msk [vmem:[#allocation2 + $0x110] sm:$0xff] %vm820_vm5, %v813_v57  ;;  %v751_v1 = vadd.f32 %v5181_v13, %v750_v59  ;;  %v4032_v3 = vpop.f32.mrb[71].mxu0  ;;  %4177 = vmatmul.mubr.msk.f32.vlgmr.msra.gmra.mrb[0].mxu1 %vm820_vm5, %v1463_v61  ;;  %v3514_v59 = vld [vmem:[%s6005_s3 + $0x1a0] sm:$0xff]  ;;  %v3515_v61 = vld [vmem:[%s6005_s3 + $0x1a8] sm:$0xff] }
 0x175   : > { %4558 = vmatpush3.bf16.msra.mxu1 %v4555_v6  ;;  %v4579_v0 = vpack.c.bf16 %v3515_v61, %v3514_v59  ;;  %v3516_v3 = vld [vmem:[%s6005_s3 + $0x1b0] sm:$0xff] }
 0x176   : > { %v814_v5 = vmax.f32 %v751_v1, 0.0  ;;  %4560 = vmatprep.subr.bf16.mxu1 %v4559_v58  ;;  %v1619_v1 = vld [vmem:[#allocation2 + $0xbe] sm:$0xff]  ;;  %v3565_v59 = vld [vmem:[%s6007_s5 + $0x70] sm:$0xff] }
 0x177   : > { %v755_v9 = vpop.f32.mrb[72].mxu0  ;;  %v1464_v14 = vld [vmem:[#allocation2 + $0x105] sm:$0xff] }
 0x178   : > { %856 = vst.msk [vmem:[#allocation2 + $0x118] sm:$0xff] %vm820_vm5, %v814_v5  ;;  %v756_v20 = vadd.f32 %v5181_v13, %v755_v9  ;;  %v4035_v21 = vpop.f32.mrb[73].mxu0  ;;  %4179 = vmatprep.mubr.msk.f32.mxu1 %vm820_vm5, %v1464_v14  ;;  %v3517_v5 = vld [vmem:[%s6005_s3 + $0x1b8] sm:$0xff]  ;;  %v1621_v14 = vld [vmem:[#allocation2 + $0xd0] sm:$0xff] }
 0x179   : > { %4562 = vmatpush3.bf16.msra.mxu1 %v4559_v58  ;;  %v1617_v58 = vld [vmem:[#allocation2 + $0xac] sm:$0xff]  ;;  %v4583_v9 = vpack.c.bf16 %v3517_v5, %v3516_v3  ;;  %v4587_v21 = vpack.c.bf16 %v3527_v17, %v3526_v15  ;;  %v3558_v17 = vld [vmem:[%s6006_s4] ss:$0 sm:$0xff] }
 0x17a   : > { %v815_v6 = vmax.f32 %v756_v20, 0.0  ;;  %4564 = vmatprep.subr.bf16.mxu1 %v4563_v8  ;;  %v1622_v20 = vld [vmem:[#allocation2 + $0xd9] sm:$0xff] }
 0x17b   : > { %v760_v24 = vpop.f32.mrb[74].mxu0  ;;  %v1465_v25 = vld [vmem:[#allocation2 + $0x10e] sm:$0xff] }
 0x17c   : > { %857 = vst.msk [vmem:[#allocation2 + $0x120] sm:$0xff] %vm820_vm5, %v815_v6  ;;  %v761_v30 = vadd.f32 %v5181_v13, %v760_v24  ;;  %v4038_v60 = vpop.f32.mrb[75].mxu0  ;;  %4180 = vmatmul.mubr.msk.f32.gmra.mrb[2].mxu1 %vm820_vm5, %v1465_v25  ;;  %v1623_v6 = vld [vmem:[#allocation2 + $0xe2] sm:$0xff]  ;;  %v3529_v24 = vld [vmem:[%s6005_s3 + $0x1d8] sm:$0xff] }
 0x17d   : > { %4566 = vmatpush3.bf16.msra.mxu1 %v4563_v8  ;;  %v1620_v8 = vld [vmem:[#allocation2 + $0xc7] sm:$0xff]  ;;  %v3533_v60 = vld [vmem:[%s6005_s3 + $0x1f8] sm:$0xff] }
 0x17e   : > { %v816_v31 = vmax.f32 %v761_v30, 0.0  ;;  %4568 = vmatprep.subr.bf16.mxu1 %v4567_v22  ;;  %v4595_v30 = vpack.c.bf16 %v3531_v29, %v3530_v27 }
 0x17f   : > { %v765_v35 = vpop.f32.mrb[76].mxu0  ;;  %v1466_v36 = vld [vmem:[#allocation2 + $0x117] sm:$0xff] }
 0x180   : > { %858 = vst.msk [vmem:[#allocation2 + $0x128] sm:$0xff] %vm820_vm5, %v816_v31  ;;  %v766_v37 = vadd.f32 %v5181_v13, %v765_v35  ;;  %v4041_v38 = vpop.f32.mrb[77].mxu0  ;;  %4182 = vmatprep.mubr.msk.f32.mxu1 %vm820_vm5, %v1466_v36  ;;  %v3543_v31 = vld [vmem:[%s6005_s3 + $0x208] sm:$0xff]  ;;  %v3545_v35 = vld [vmem:[%s6005_s3 + $0x218] sm:$0xff] }
 0x181   : > { %4570 = vmatpush3.bf16.msra.mxu1 %v4567_v22  ;;  %v3528_v22 = vld [vmem:[%s6005_s3 + $0x1d0] sm:$0xff]  ;;  %v3547_v36 = vld [vmem:[%s6005_s3 + $0x228] sm:$0xff]  ;;  %v3549_v38 = vld [vmem:[%s6005_s3 + $0x238] sm:$0xff] }
 0x182   : > { %v817_v39 = vmax.f32 %v766_v37, 0.0  ;;  %4572 = vmatprep.subr.bf16.mxu1 %v4571_v34  ;;  %v4591_v25 = vpack.c.bf16 %v3529_v24, %v3528_v22 }
 0x183   : > { %v770_v40 = vpop.f32.mrb[78].mxu0  ;;  %v1467_v42 = vld [vmem:[#allocation2 + $0x120] sm:$0xff] }
 0x184   : > { %859 = vst.msk [vmem:[#allocation2 + $0x130] sm:$0xff] %vm820_vm5, %v817_v39  ;;  %v771_v43 = vadd.f32 %v5181_v13, %v770_v40  ;;  %v4044_v45 = vpop.f32.mrb[79].mxu0  ;;  %4183 = vmatmul.mubr.msk.f32.gmra.mrb[4].mxu1 %vm820_vm5, %v1467_v42  ;;  %v3513_v13 = vld [vmem:[%s6005_s3 + $0x198] sm:$0xff]  ;;  %v3561_v40 = vld [vmem:[%s6007_s5 + $0x50] sm:$0xff] }
 0x185   : > { %v4575_v57 = vpack.c.bf16 %v3513_v13, %v3512_v53  ;;  %v3562_v42 = vld [vmem:[%s6007_s5 + $0x58] sm:$0xff]  ;;  %v3564_v53 = vld [vmem:[%s6007_s5 + $0x68] sm:$0xff] }
 0x186   : > { %v818_v47 = vmax.f32 %v771_v43, 0.0  ;;  %v4623_v43 = vpack.c.bf16 %v3562_v42, %v3561_v40 }
 0x187   : > { %v775_v48 = vpop.f32.mrb[80].mxu0 }
 0x188   : > { %860 = vst.msk [vmem:[#allocation2 + $0x138] sm:$0xff] %vm820_vm5, %v818_v47  ;;  %v4047_v49 = vpop.f32.mrb[81].mxu0  ;;  %v2226_v48 = vld [vmem:[%s6007_s5 + $0x20] sm:$0xff] }
 0x189   : > { %v2227_v49 = vld [vmem:[%s6007_s5 + $0x28] sm:$0xff] }
 0x18b   : > { %v1468_v12 = vld [vmem:[#allocation2 + $0x129] sm:$0xff] }
 0x18c   : > { %4185 = vmatprep.mubr.msk.f32.mxu1 %vm820_vm5, %v1468_v12  ;;  %v4643_v12 = vpack.c.bf16 %v2227_v49, %v2226_v48 }
 0x18f   : > { %v1469_v52 = vld [vmem:[#allocation2 + $0x132] sm:$0xff] }
 0x190   : > { %4186 = vmatmul.mubr.msk.f32.gmra.mrb[6].mxu1 %vm820_vm5, %v1469_v52  ;;  %v3563_v52 = vld [vmem:[%s6007_s5 + $0x60] sm:$0xff] }
 0x191   : > { %4204 = vmatprep.mubr.msk.f32.mxu1 %vm820_vm5, %v1616_v54  ;;  %v4627_v13 = vpack.c.bf16 %v3564_v53, %v3563_v52 }
 0x194   : > { %4205 = vmatmul.mubr.msk.f32.vlgmr.msra.gmra.mrb[0].mxu1 %vm820_vm5, %v1617_v58  ;;  %v2229_v58 = vld [vmem:[%s6007_s5 + $0x38] sm:$0xff] }
 0x195   : > { %4574 = vmatpush3.bf16.msra.mxu1 %v4571_v34  ;;  %4207 = vmatprep.mubr.msk.f32.mxu1 %vm820_vm5, %v1618_v63  ;;  %v3544_v34 = vld [vmem:[%s6005_s3 + $0x210] sm:$0xff] }
 0x196   : > { %4576 = vmatprep.subr.bf16.mxu1 %v4575_v57 }
 0x198   : > { %4208 = vmatmul.mubr.msk.f32.gmra.mrb[2].mxu1 %vm820_vm5, %v1619_v1 }
 0x199   : > { %4578 = vmatpush3.bf16.msra.mxu1 %v4575_v57  ;;  %4210 = vmatprep.mubr.msk.f32.mxu1 %vm820_vm5, %v1620_v8  ;;  %v2228_v57 = vld [vmem:[%s6007_s5 + $0x30] sm:$0xff]  ;;  %v3571_v8 = vld [vmem:[%s6007_s5 + $0x80] sm:$0xff] }
 0x19a   : > { %4580 = vmatprep.subr.bf16.mxu1 %v4579_v0  ;;  %v4647_v63 = vpack.c.bf16 %v2229_v58, %v2228_v57 }
 0x19c   : > { %4211 = vmatmul.mubr.msk.f32.gmra.mrb[4].mxu1 %vm820_vm5, %v1621_v14 }
 0x19d   : > { %4582 = vmatpush3.bf16.msra.mxu1 %v4579_v0  ;;  %4213 = vmatprep.mubr.msk.f32.mxu1 %vm820_vm5, %v1622_v20  ;;  %v3566_v0 = vld [vmem:[%s6007_s5 + $0x78] sm:$0xff] }
 0x19e   : > { %4584 = vmatprep.subr.bf16.mxu1 %v4583_v9  ;;  %v4631_v1 = vpack.c.bf16 %v3566_v0, %v3565_v59 }
 0x1a0   : > { %4214 = vmatmul.mubr.msk.f32.gmra.mrb[6].mxu1 %vm820_vm5, %v1623_v6 }
 0x1a1   : > { %4586 = vmatpush3.bf16.msra.mxu1 %v4583_v9  ;;  %4232 = vmatprep.mubr.msk.f32.mxu1 %vm820_vm5, %v5287_v2  ;;  %v3532_v2 = vld [vmem:[%s6005_s3 + $0x1f0] sm:$0xff]  ;;  %v3572_v9 = vld [vmem:[%s6007_s5 + $0x88] sm:$0xff] }
 0x1a2   : > { %4588 = vmatprep.subr.bf16.mxu1 %v4587_v21  ;;  %v5631_v14 = vpack.c.bf16 %v3572_v9, %v3571_v8 }
 0x1a4   : > { %4233 = vmatmul.mubr.msk.f32.vlgmr.msra.gmra.mrb[0].mxu1 %vm820_vm5, %v5299_v7  ;;  %v4599_v7 = vpack.c.bf16 %v3533_v60, %v3532_v2 }
 0x1a5   : > { %4590 = vmatpush3.bf16.msra.mxu1 %v4587_v21  ;;  %4235 = vmatprep.mubr.msk.f32.mxu1 %vm820_vm5, %v5303_v11  ;;  %v3542_v11 = vld [vmem:[%s6005_s3 + $0x200] sm:$0xff] }
 0x1a6   : > { %4592 = vmatprep.subr.bf16.mxu1 %v4591_v25 }
 0x1a8   : > { %4236 = vmatmul.mubr.msk.f32.gmra.mrb[2].mxu1 %vm820_vm5, %v5315_v19  ;;  %v4603_v19 = vpack.c.bf16 %v3543_v31, %v3542_v11 }
 0x1a9   : > { %4594 = vmatpush3.bf16.msra.mxu1 %v4591_v25  ;;  %4238 = vmatprep.mubr.msk.f32.mxu1 %vm820_vm5, %v5319_v23  ;;  %v1770_v23 = vld [vmem:[#allocation2 + $0x48] sm:$0xff] }
 0x1aa   : > { %4596 = vmatprep.subr.bf16.mxu1 %v4595_v30 }
 0x1ac   : > { %4239 = vmatmul.mubr.msk.f32.gmra.mrb[4].mxu1 %vm820_vm5, %v5326_v28  ;;  %v4607_v28 = vpack.c.bf16 %v3545_v35, %v3544_v34 }
 0x1ad   : > { %4598 = vmatpush3.bf16.msra.mxu1 %v4595_v30  ;;  %4241 = vmatprep.mubr.msk.f32.mxu1 %vm820_vm5, %v5336_v32  ;;  %v3546_v32 = vld [vmem:[%s6005_s3 + $0x220] sm:$0xff] }
 0x1ae   : > { %4600 = vmatprep.subr.bf16.mxu1 %v4599_v7  ;;  %v4611_v37 = vpack.c.bf16 %v3547_v36, %v3546_v32 }
 0x1b0   : > { %4242 = vmatmul.mubr.msk.f32.gmra.mrb[6].mxu1 %vm820_vm5, %v1770_v23 }
 0x1b1   : > { %4602 = vmatpush3.bf16.msra.mxu1 %v4599_v7  ;;  %4260 = vmatprep.mubr.msk.f32.mxu1 %vm820_vm5, %v5219_v18  ;;  %v3548_v18 = vld [vmem:[%s6005_s3 + $0x230] sm:$0xff] }
 0x1b2   : > { %4604 = vmatprep.subr.bf16.mxu1 %v4603_v19 }
 0x1b4   : > { %4261 = vmatmul.mubr.msk.f32.vlgmr.msra.gmra.mrb[0].mxu1 %vm820_vm5, %v5232_v26  ;;  %v4615_v26 = vpack.c.bf16 %v3549_v38, %v3548_v18 }
 0x1b5   : > { %4606 = vmatpush3.bf16.msra.mxu1 %v4603_v19  ;;  %4263 = vmatprep.mubr.msk.f32.mxu1 %vm820_vm5, %v5244_v33  ;;  %v1896_v33 = vld [vmem:[#allocation2 + $0x99] sm:$0xff] }
 0x1b6   : > { %4608 = vmatprep.subr.bf16.mxu1 %v4607_v28 }
 0x1b8   : > { %4264 = vmatmul.mubr.msk.f32.gmra.mrb[2].mxu1 %vm820_vm5, %v5256_v41  ;;  %v2022_v41 = vld [vmem:[#allocation2 + $0x49] sm:$0xff] }
 0x1b9   : > { %4610 = vmatpush3.bf16.msra.mxu1 %v4607_v28  ;;  %4266 = vmatprep.mubr.msk.f32.mxu1 %vm820_vm5, %v5262_v46  ;;  %v2222_v46 = vld [vmem:[%s6007_s5] sm:$0xff] }
 0x1ba   : > { %4612 = vmatprep.subr.bf16.mxu1 %v4611_v37 }
 0x1bc   : > { %4267 = vmatmul.mubr.msk.f32.gmra.mrb[4].mxu1 %vm820_vm5, %v5268_v51  ;;  %v2223_v51 = vld [vmem:[%s6007_s5 + $0x8] sm:$0xff] }
 0x1bd   : > { %4614 = vmatpush3.bf16.msra.mxu1 %v4611_v37  ;;  %4269 = vmatprep.mubr.msk.f32.mxu1 %vm820_vm5, %v5274_v56  ;;  %v4635_v56 = vpack.c.bf16 %v2223_v51, %v2222_v46 }
 0x1be   : > { %4616 = vmatprep.subr.bf16.mxu1 %v4615_v26 }
 0x1c0   : > { %4270 = vmatmul.mubr.msk.f32.gmra.mrb[6].mxu1 %vm820_vm5, %v1896_v33 }
 0x1c1   : > { %4618 = vmatpush3.bf16.msra.mxu1 %v4615_v26  ;;  %4288 = vmatprep.mubr.msk.f32.mxu1 %vm820_vm5, %v5351_v44  ;;  %v3559_v44 = vld [vmem:[%s6007_s5 + $0x40] sm:$0xff] }
 0x1c2   : > { %4636 = vmatprep.subr.bf16.mxu1 %v4635_v56 }
 0x1c4   : > { %4289 = vmatmul.mubr.msk.f32.vlgmr.msra.gmra.mrb[0].mxu1 %vm820_vm5, %v5358_v50  ;;  %v3560_v50 = vld [vmem:[%s6007_s5 + $0x48] sm:$0xff] }
 0x1c5   : > { %4291 = vmatprep.mubr.msk.f32.mxu1 %vm820_vm5, %v5368_v55  ;;  %v4619_v55 = vpack.c.bf16 %v3560_v50, %v3559_v44  ;;  %4638 = vmatpush3.bf16.msra.mxu1 %v4635_v56 }
 0x1c7   : > { %4620 = vmatprep.subr.bf16.mxu0 %v4619_v55 }
 0x1c8   : > { %4292 = vmatmul.mubr.msk.f32.gmra.mrb[2].mxu1 %vm820_vm5, %v5375_v62  ;;  %4622 = vmatpush3.bf16.msra.mxu0 %v4619_v55 }
 0x1c9   : > { %4294 = vmatprep.mubr.msk.f32.mxu1 %vm820_vm5, %v5385_v4  ;;  %4624 = vmatprep.subr.bf16.mxu0 %v4623_v43 }
 0x1cc   : > { %4295 = vmatmul.mubr.msk.f32.gmra.mrb[4].mxu1 %vm820_vm5, %v5392_v10  ;;  %v2224_v10 = vld [vmem:[%s6007_s5 + $0x10] sm:$0xff]  ;;  %4626 = vmatpush3.bf16.msra.mxu0 %v4623_v43 }
 0x1cd   : > { %4297 = vmatprep.mubr.msk.f32.mxu1 %vm820_vm5, %v5396_v16  ;;  %v2225_v16 = vld [vmem:[%s6007_s5 + $0x18] sm:$0xff]  ;;  %4628 = vmatprep.subr.bf16.mxu0 %v4627_v13 }
 0x1ce   : > { %v4639_v39 = vpack.c.bf16 %v2225_v16, %v2224_v10 }
 0x1d0   : > { %4298 = vmatmul.mubr.msk.f32.gmra.mrb[6].mxu1 %vm820_vm5, %v2022_v41  ;;  %4640 = vmatprep.subr.bf16.mxu1 %v4639_v39 }
 0x1d1   : > { %4642 = vmatpush3.bf16.msra.mxu1 %v4639_v39  ;;  %4630 = vmatpush3.bf16.msra.mxu0 %v4627_v13 }
 0x1d2   : > { %4644 = vmatprep.subr.bf16.mxu1 %v4643_v12  ;;  %4632 = vmatprep.subr.bf16.mxu0 %v4631_v1 }
 0x1d5   : > { %4646 = vmatpush3.bf16.msra.mxu1 %v4643_v12  ;;  %4634 = vmatpush3.bf16.msra.mxu0 %v4631_v1  ;;  %v3573_v1 = vld [vmem:[%s6007_s5 + $0x90] sm:$0xff] }
 0x1d6   : > { %4648 = vmatprep.subr.bf16.mxu1 %v4647_v63 }
 0x1d9   : > { %4650 = vmatpush3.bf16.msra.mxu1 %v4647_v63 }
 0x1da   : > { %4652 = vmatprep.subr.bf16.mxu1 %v5631_v14 }
 0x223   : > { %v4122_v62 = vpop.f32.mrb[82].mxu0 }
 0x224   : > { %v1261_v4 = vpop.f32.mrb[83].mxu0 }
 0x227   : > { %v4125_v45 = vpop.f32.mrb[84].mxu0 }
 0x228   : > { %v1271_v47 = vpop.f32.mrb[85].mxu0 }
 0x22b   : > { %v4128_v54 = vpop.f32.mrb[86].mxu0 }
 0x22c   : > { %v1281_v61 = vpop.f32.mrb[87].mxu0 }
 0x22f   : > { %v4131_v3 = vpop.f32.mrb[88].mxu0 }
 0x230   : > { %v1291_v5 = vpop.f32.mrb[89].mxu0 }
 0x297   : > { %v4290_v15 = vpop.f32.mrb[0].mxu1 }
 0x298   : > { %v4763_v20 = vadd.f32 %v4290_v15, %v4122_v62  ;;  %v2101_v21 = vpop.f32.mrb[1].mxu1 }
 0x299   : > { %v4764_v6 = vadd.f32 %v2101_v21, %v1261_v4 }
 0x29a   : > { %v2156_v22 = vadd.f32 %v4763_v20, %v3558_v17 }
 0x29b   : > { %v2155_v24 = vadd.f32 %v4764_v6, %v3558_v17  ;;  %v4293_v25 = vpop.f32.mrb[2].mxu1 }
 0x29c   : > { %v2164_v27 = vmax.f32 %v2156_v22, 0.0  ;;  %v4765_v29 = vadd.f32 %v4293_v25, %v4125_v45  ;;  %v2111_v30 = vpop.f32.mrb[3].mxu1  ;;  %v3574_v25 = vld [vmem:[%s6007_s5 + $0x98] sm:$0xff] }
 0x29d   : > { %v2163_v2 = vmax.f32 %v2155_v24, 0.0  ;;  %v4766_v60 = vadd.f32 %v2111_v30, %v1271_v47 }
 0x29e   : > { %2172 = vst.msk [vmem:[#allocation3 + $0x8] sm:$0xff] %vm820_vm5, %v2164_v27  ;;  %v2158_v7 = vadd.f32 %v4765_v29, %v3558_v17 }
 0x29f   : > { %2171 = vst.msk [vmem:[#allocation3] sm:$0xff] %vm820_vm5, %v2163_v2  ;;  %v2157_v11 = vadd.f32 %v4766_v60, %v3558_v17  ;;  %v4296_v31 = vpop.f32.mrb[4].mxu1 }
 0x2a0   : > { %v2166_v19 = vmax.f32 %v2158_v7, 0.0  ;;  %v4767_v23 = vadd.f32 %v4296_v31, %v4128_v54  ;;  %v2121_v34 = vpop.f32.mrb[5].mxu1 }
 0x2a1   : > { %v2165_v35 = vmax.f32 %v2157_v11, 0.0  ;;  %v4768_v28 = vadd.f32 %v2121_v34, %v1281_v61 }
 0x2a2   : > { %2174 = vst.msk [vmem:[#allocation3 + $0x18] sm:$0xff] %vm820_vm5, %v2166_v19  ;;  %v2160_v32 = vadd.f32 %v4767_v23, %v3558_v17 }
 0x2a3   : > { %2173 = vst.msk [vmem:[#allocation3 + $0x10] sm:$0xff] %vm820_vm5, %v2165_v35  ;;  %v2159_v36 = vadd.f32 %v4768_v28, %v3558_v17  ;;  %v4299_v37 = vpop.f32.mrb[6].mxu1 }
 0x2a4   : > { %v2168_v18 = vmax.f32 %v2160_v32, 0.0  ;;  %v2131_v38 = vpop.f32.mrb[7].mxu1 }
 0x2a5   : > { %v2167_v26 = vmax.f32 %v2159_v36, 0.0  ;;  %v4770_v33 = vadd.f32 %v2131_v38, %v1291_v5  ;;  %v5688_v11 = vld [vmem:[#allocation3 + $0xa] sm:$0x1]  ;;  %v5690_v31 = vld [vmem:[#allocation3 + $0xc] sm:$0x1]  ;;  %v4655_v36 = vpack.c.bf16 %v3574_v25, %v3573_v1 }
 0x2a6   : > { %2176 = vst.msk [vmem:[#allocation3 + $0x28] sm:$0xff] %vm820_vm5, %v2168_v18  ;;  %v2231_v41 = vld [vmem:[#allocation3 + $0x3] sm:$0x1]  ;;  %v2232_v46 = vld [vmem:[#allocation3 + $0x5] sm:$0x1] }
 0x2a7   : > { %2175 = vst.msk [vmem:[#allocation3 + $0x20] sm:$0xff] %vm820_vm5, %v2167_v26  ;;  %v2161_v51 = vadd.f32 %v4770_v33, %v3558_v17  ;;  %v2230_v56 = vld [vmem:[#allocation3 + $0x1] sm:$0x1]  ;;  %v2240_v44 = vrot.slane %v2231_v41, 7  ;;  %v2180_v50 = vld [vmem:[#allocation3 + $0x2] sm:$0x1] }
 0x2a8   : > { %v2243_v55 = vrot.slane %v2232_v46, 6  ;;  %v2181_v62 = vld [vmem:[#allocation3 + $0x4] sm:$0x1]  ;;  %v2189_v4 = vrot.slane %v2180_v50, 7  ;;  %v2179_v39 = vld [vmem:[#allocation3] sm:$0x1] }
 0x2a9   : > { %v2169_v10 = vmax.f32 %v2161_v51, 0.0  ;;  %v2260_v16 = vsel %vm505_vm0, %v2230_v56, %v2240_v44  ;;  %v2192_v40 = vrot.slane %v2181_v62, 6  ;;  %v2441_v58 = vrot.slane %v2181_v62, 7  ;;  %v2438_v2 = vld [vmem:[#allocation3 + $0x6] sm:$0x1]  ;;  %v3575_v41 = vld [vmem:[%s6007_s5 + $0xa0] sm:$0xff] }
 0x2aa   : > { %v2233_v42 = vld [vmem:[#allocation3 + $0x11] sm:$0x1]  ;;  %v2234_v43 = vld [vmem:[#allocation3 + $0x13] sm:$0x1]  ;;  %v5644_v45 = vld [vmem:[#allocation3 + $0x15] sm:$0x1]  ;;  %v2209_v47 = vsel %vm505_vm0, %v2179_v39, %v2189_v4  ;;  %v2261_v53 = vsel %vm2210_vm6, %v2260_v16, %v2243_v55 }
 0x2ab   : > { %2177 = vst.msk [vmem:[#allocation3 + $0x30] sm:$0xff] %vm820_vm5, %v2169_v10  ;;  %v2246_v48 = vrot.slane %v2233_v42, 5  ;;  %v2249_v49 = vrot.slane %v2234_v43, 4  ;;  %v3053_v12 = vrot.slane %v2234_v43, 7  ;;  %v5648_v52 = vld [vmem:[#allocation3 + $0x10] sm:$0x1]  ;;  %v2211_v0 = vsel %vm2210_vm6, %v2209_v47, %v2192_v40 }
 0x2ac   : > { %v5651_v13 = vld [vmem:[#allocation3 + $0x12] sm:$0x1]  ;;  %v5653_v54 = vld [vmem:[#allocation3 + $0x14] sm:$0x1]  ;;  %v2195_v57 = vrot.slane %v5648_v52, 5  ;;  %v2252_v59 = vrot.slane %v5644_v45, 3  ;;  %v2457_v32 = vsel %vm505_vm0, %v2180_v50, %v2441_v58 }
 0x2ad   : > { %v2262_v61 = vsel %vm2212_vm7, %v2261_v53, %v2246_v48  ;;  %v2198_v63 = vrot.slane %v5651_v13, 4  ;;  %v5672_v17 = vsel %vm505_vm0, %v2233_v42, %v3053_v12  ;;  %v2201_v24 = vrot.slane %v5653_v54, 3  ;;  %v5698_v28 = vld [vmem:[#allocation3 + $0x16] sm:$0x1]  ;;  %v2559_v33 = vld [vmem:[#allocation3 + $0x18] sm:$0x1] }
 0x2ae   : > { %v5663_v3 = vld [vmem:[#allocation3 + $0x21] sm:$0x1]  ;;  %v5665_v5 = vld [vmem:[#allocation3 + $0x23] sm:$0x1]  ;;  %v2263_v8 = vsel %vm2214_vm8, %v2262_v61, %v2249_v49  ;;  %v5668_v9 = vld [vmem:[#allocation3 + $0x20] sm:$0x1]  ;;  %v2213_v15 = vsel %vm2212_vm7, %v2211_v0, %v2195_v57 }
 0x2af   : > { %v2255_v20 = vrot.slane %v5663_v3, 2  ;;  %v2258_v21 = vrot.slane %v5665_v5, 1  ;;  %v2264_v6 = vsel %vm2216_vm9, %v2263_v8, %v2252_v59  ;;  %v5677_v22 = vld [vmem:[#allocation3 + $0x22] sm:$0x1]  ;;  %v2204_v27 = vrot.slane %v5668_v9, 2  ;;  %v3578_v49 = vld [vmem:[%s6007_s5 + $0xb8] sm:$0xff] }
 0x2b0   : > { %v2207_v29 = vrot.slane %v5677_v22, 1  ;;  %v2215_v30 = vsel %vm2214_vm8, %v2213_v15, %v2198_v63  ;;  %v5694_v34 = vld [vmem:[#allocation3 + $0x25] sm:$0x1]  ;;  %v5696_v35 = vld [vmem:[#allocation3 + $0x24] sm:$0x1]  ;;  %v2444_v18 = vrot.slane %v2438_v2, 6 }
 0x2b1   : > { %v2265_v60 = vsel %vm2218_vm10, %v2264_v6, %v2255_v20  ;;  %v2217_v7 = vsel %vm2216_vm9, %v2215_v30, %v2201_v24  ;;  %v2446_v38 = vrot.slane %v5651_v13, 5  ;;  %v2448_v26 = vrot.slane %v5653_v54, 4  ;;  %v3576_v46 = vld [vmem:[%s6007_s5 + $0xa8] sm:$0xff]  ;;  %v5714_v51 = vld [vmem:[#allocation3 + $0x1a] sm:$0x1]  ;;  %v3584_v20 = vld [vmem:[%s6007_s5 + $0xd8] sm:$0xff] }
 0x2b2   : > { %v2266_v19 = vsel %vm2220_vm11, %v2265_v60, %v2258_v21  ;;  %v2219_v23 = vsel %vm2218_vm10, %v2217_v7, %v2204_v27  ;;  %v2453_v56 = vrot.slane %v5677_v22, 2  ;;  %v2458_v44 = vsel %vm2210_vm6, %v2457_v32, %v2444_v18  ;;  %v2556_v16 = vld [vmem:[#allocation3 + $0x8] sm:$0x1]  ;;  %v5738_v57 = vld [vmem:[#allocation3 + $0x1c] sm:$0x1]  ;;  %v3582_v0 = vld [vmem:[%s6007_s5 + $0xc8] sm:$0xff] }
 0x2b3   : > { %4316 = vmatprep.mubr.msk.f32.mxu0 %vm820_vm5, %v2266_v19  ;;  %v2221_v37 = vsel %vm2220_vm11, %v2219_v23, %v2207_v29  ;;  %v2566_v50 = vrot.slane %v5688_v11, 7  ;;  %v2569_v55 = vrot.slane %v5690_v31, 6  ;;  %v2451_v62 = vrot.slane %v5698_v28, 3  ;;  %v3581_v63 = vld [vmem:[%s6007_s5 + $0xc0] sm:$0xff]  ;;  %v2562_v1 = vld [vmem:[#allocation3 + $0x28] sm:$0x1] }
 0x2b4   : > { %4335 = vmatprep.mubr.msk.f32.mxu1 %vm820_vm5, %v2221_v37  ;;  %4317 = vmatmul.mubr.msk.f32.vlgmr.msra.gmra.mrb[90].mxu0 %vm820_vm5, %v5694_v34  ;;  %v2455_v4 = vrot.slane %v5696_v35, 1  ;;  %v2459_v10 = vsel %vm2212_vm7, %v2458_v44, %v2446_v38  ;;  %v2572_v39 = vrot.slane %v2559_v33, 5  ;;  %v4659_v42 = vpack.c.bf16 %v3576_v46, %v3575_v41  ;;  %v3585_v21 = vld [vmem:[%s6007_s5 + $0xe0] sm:$0xff]  ;;  %v5762_v25 = vld [vmem:[#allocation3 + $0x2a] sm:$0x1]  ;;  %v3586_v29 = vld [vmem:[%s6007_s5 + $0xe8] sm:$0xff] }
 0x2b5   : > { %4336 = vmatmul.mubr.msk.f32.vlgmr.msra.gmra.mrb[8].mxu1 %vm820_vm5, %v5696_v35  ;;  %v2460_v40 = vsel %vm2214_vm8, %v2459_v10, %v2448_v26  ;;  %v2575_v43 = vrot.slane %v5714_v51, 4  ;;  %v2586_v47 = vsel %vm505_vm0, %v2556_v16, %v2566_v50  ;;  %v3055_v59 = vrot.slane %v5644_v45, 6  ;;  %v3583_v45 = vld [vmem:[%s6007_s5 + $0xd0] sm:$0xff]  ;;  %v5772_v23 = vld [vmem:[#allocation3 + $0x26] sm:$0x1] }
 0x2b6   : > { %4654 = vmatpush3.bf16.msra.mxu1 %v5631_v14  ;;  %v2461_v48 = vsel %vm2216_vm9, %v2460_v40, %v2451_v62  ;;  %v3577_v14 = vld [vmem:[%s6007_s5 + $0xb0] sm:$0xff]  ;;  %v2587_v12 = vsel %vm2210_vm6, %v2586_v47, %v2569_v55  ;;  %v3057_v6 = vrot.slane %v5663_v3, 5  ;;  %v3169_v24 = vrot.slane %v5653_v54, 7  ;;  %v2932_v38 = vld [vmem:[#allocation3 + $0x30] sm:$0x1] }
 0x2b7   : > { %4656 = vmatprep.subr.bf16.mxu1 %v4655_v36  ;;  %v2462_v53 = vsel %vm2218_vm10, %v2461_v48, %v2453_v56  ;;  %v2588_v58 = vsel %vm2212_vm7, %v2587_v12, %v2572_v39  ;;  %v4663_v8 = vpack.c.bf16 %v3578_v49, %v3577_v14  ;;  %v2578_v27 = vrot.slane %v5738_v57, 3  ;;  %v2686_v19 = vld [vmem:[#allocation3 + $0xb] sm:$0x1]  ;;  %v2687_v18 = vld [vmem:[#allocation3 + $0xd] sm:$0x1] }
 0x2b8   : > { %v2463_v61 = vsel %vm2220_vm11, %v2462_v53, %v2455_v4  ;;  %v2589_v15 = vsel %vm2214_vm8, %v2588_v58, %v2575_v43  ;;  %v3059_v30 = vrot.slane %v5665_v5, 4  ;;  %v2939_v2 = vrot.slane %v5668_v9, 5  ;;  %v2688_v41 = vld [vmem:[#allocation3 + $0x19] sm:$0x1]  ;;  %v2933_v56 = vld [vmem:[#allocation3 + $0x32] sm:$0x1] }
 0x2b9   : > { %4354 = vmatprep.mubr.msk.f32.mxu1 %vm820_vm5, %v2463_v61  ;;  %v3173_v60 = vrot.slane %v5677_v22, 5  ;;  %v2581_v7 = vrot.slane %v2562_v1, 2  ;;  %v3061_v3 = vrot.slane %v5694_v34, 3  ;;  %v2590_v32 = vsel %vm2216_vm9, %v2589_v15, %v2578_v27  ;;  %v3050_v4 = vld [vmem:[#allocation3 + $0x31] sm:$0x1] }
 0x2ba   : > { %4658 = vmatpush3.bf16.msra.mxu1 %v4655_v36  ;;  %v2935_v36 = vrot.slane %v5651_v13, 7  ;;  %v3070_v37 = vsel %vm2210_vm6, %v5672_v17, %v3055_v59  ;;  %v4667_v5 = vpack.c.bf16 %v3582_v0, %v3581_v63  ;;  %v2584_v9 = vrot.slane %v5762_v25, 1  ;;  %v3051_v40 = vld [vmem:[#allocation3 + $0x33] sm:$0x1]  ;;  %v5795_v49 = vld [vmem:[#allocation3 + $0x34] sm:$0x1] }
 0x2bb   : > { %4660 = vmatprep.subr.bf16.mxu1 %v4659_v42  ;;  %v2937_v26 = vrot.slane %v5653_v54, 6  ;;  %v4671_v33 = vpack.c.bf16 %v3584_v20, %v3583_v45  ;;  %v5780_v34 = vpack.c.bf16 %v3586_v29, %v3585_v21  ;;  %v2695_v46 = vrot.slane %v2686_v19, 7  ;;  %v2689_v53 = vld [vmem:[#allocation3 + $0x1b] sm:$0x1]  ;;  %v3587_v21 = vld [vmem:[%s6007_s5 + $0xf0] sm:$0xff] }
 0x2bc   : > { %v2941_v44 = vrot.slane %v5677_v22, 4  ;;  %v3175_v50 = vrot.slane %v5696_v35, 4  ;;  %v3171_v17 = vrot.slane %v5698_v28, 6  ;;  %v2591_v55 = vsel %vm2218_vm10, %v2590_v32, %v2581_v7  ;;  %v2685_v22 = vld [vmem:[#allocation3 + $0x9] sm:$0x1] }
 0x2bd   : > { %v2951_v62 = vsel %vm505_vm0, %v5648_v52, %v2935_v36  ;;  %v3177_v54 = vrot.slane %v5772_v23, 3  ;;  %v2698_v10 = vrot.slane %v2687_v18, 6  ;;  %v2946_v16 = vrot.slane %v2932_v38, 2  ;;  %v2690_v19 = vld [vmem:[#allocation3 + $0x1d] sm:$0x1] }
 0x2be   : > { %4662 = vmatpush3.bf16.msra.mxu1 %v4659_v42  ;;  %v2952_v39 = vsel %vm2210_vm6, %v2951_v62, %v2937_v26  ;;  %v2701_v42 = vrot.slane %v2688_v41, 5  ;;  %v2943_v43 = vrot.slane %v5696_v35, 3  ;;  %v2949_v28 = vrot.slane %v2933_v56, 1  ;;  %v2691_v32 = vld [vmem:[#allocation3 + $0x29] sm:$0x1] }
 0x2bf   : > { %4664 = vmatprep.subr.bf16.mxu1 %v4663_v8  ;;  %v2953_v47 = vsel %vm2212_vm7, %v2952_v39, %v2939_v2  ;;  %v2592_v48 = vsel %vm2220_vm11, %v2591_v55, %v2584_v9  ;;  %v2715_v52 = vsel %vm505_vm0, %v2685_v22, %v2695_v46  ;;  %v3064_v12 = vrot.slane %v3050_v4, 2  ;;  %v2692_v38 = vld [vmem:[#allocation3 + $0x2b] sm:$0x1]  ;;  %v2564_v62 = vld [vmem:[#allocation3 + $0x2c] sm:$0x1]  ;;  %v3595_v4 = vld [vmem:[%s6007_s5 + $0x120] sm:$0xff] }
 0x2c0   : > { %v2954_v14 = vsel %vm2214_vm8, %v2953_v47, %v2941_v44  ;;  %v3067_v59 = vrot.slane %v3051_v40, 1  ;;  %v3071_v35 = vsel %vm2212_vm7, %v3070_v37, %v3057_v6  ;;  %v3183_v61 = vsel %vm505_vm0, %v5651_v13, %v3169_v24  ;;  %v3588_v6 = vld [vmem:[%s6007_s5 + $0xf8] sm:$0xff]  ;;  %v3591_v37 = vld [vmem:[%s6007_s5 + $0x100] sm:$0xff]  ;;  %v3593_v46 = vld [vmem:[%s6007_s5 + $0x110] sm:$0xff] }
 0x2c1   : > { %v2955_v58 = vsel %vm2216_vm9, %v2954_v14, %v2943_v43  ;;  %v3179_v0 = vrot.slane %v2933_v56, 2  ;;  %v3072_v1 = vsel %vm2214_vm8, %v3071_v35, %v3059_v30  ;;  %v3181_v45 = vrot.slane %v5795_v49, 1  ;;  %v3594_v56 = vld [vmem:[%s6007_s5 + $0x118] sm:$0xff] }
 0x2c2   : > { %4666 = vmatpush3.bf16.msra.mxu1 %v4663_v8  ;;  %v2956_v63 = vsel %vm2218_vm10, %v2955_v58, %v2946_v16  ;;  %v3184_v8 = vsel %vm2210_vm6, %v3183_v61, %v3171_v17  ;;  %v3073_v20 = vsel %vm2216_vm9, %v3072_v1, %v3061_v3  ;;  %v2704_v24 = vrot.slane %v2689_v53, 4  ;;  %v2814_v17 = vld [vmem:[#allocation3 + $0xe] sm:$0x1]  ;;  %v3604_v35 = vld [vmem:[%s6007_s5 + $0x158] sm:$0xff]  ;;  %v3605_v1 = vld [vmem:[%s6007_s5 + $0x160] sm:$0xff] }
 0x2c3   : > { %4668 = vmatprep.subr.bf16.mxu1 %v4667_v5  ;;  %v5808_v15 = vsel %vm2220_vm11, %v2956_v63, %v2949_v28  ;;  %v3185_v13 = vsel %vm2212_vm7, %v3184_v8, %v3173_v60  ;;  %v2716_v27 = vsel %vm2210_vm6, %v2715_v52, %v2698_v10  ;;  %v3074_v29 = vsel %vm2218_vm10, %v3073_v20, %v3064_v12  ;;  %v3606_v8 = vld [vmem:[%s6007_s5 + $0x168] sm:$0xff] }
 0x2c4   : > { %v3186_v30 = vsel %vm2214_vm8, %v3185_v13, %v3175_v50  ;;  %v2717_v2 = vsel %vm2212_vm7, %v2716_v27, %v2701_v42  ;;  %v5824_v7 = vsel %vm2220_vm11, %v3074_v29, %v3067_v59  ;;  %v2707_v18 = vrot.slane %v2690_v19, 3  ;;  %v3597_v42 = vld [vmem:[%s6007_s5 + $0x130] sm:$0xff]  ;;  %v3612_v27 = vld [vmem:[%s6007_s5 + $0x188] sm:$0xff] }
 0x2c5   : > { %4355 = vmatmul.mubr.msk.f32.vlgmr.msra.gmra.mrb[8].mxu1 %vm820_vm5, %v5772_v23  ;;  %v3187_v60 = vsel %vm2216_vm9, %v3186_v30, %v3177_v54  ;;  %v4679_v23 = vpack.c.bf16 %v3588_v6, %v3587_v21  ;;  %v2718_v9 = vsel %vm2214_vm8, %v2717_v2, %v2704_v24  ;;  %v2710_v26 = vrot.slane %v2691_v32, 2  ;;  %v3596_v54 = vld [vmem:[%s6007_s5 + $0x128] sm:$0xff]  ;;  %v3603_v59 = vld [vmem:[%s6007_s5 + $0x150] sm:$0xff]  ;;  %v3608_v21 = vld [vmem:[%s6007_s5 + $0x178] sm:$0xff] }
 0x2c6   : > { %4670 = vmatpush3.bf16.msra.mxu1 %v4667_v5  ;;  %4373 = vmatprep.mubr.msk.f32.mxu1 %vm820_vm5, %v2592_v48  ;;  %v3188_v3 = vsel %vm2218_vm10, %v3187_v60, %v3179_v0  ;;  %v3592_v5 = vld [vmem:[%s6007_s5 + $0x108] sm:$0xff]  ;;  %v2719_v41 = vsel %vm2216_vm9, %v2718_v9, %v2707_v18  ;;  %v2817_v44 = vrot.slane %v5690_v31, 7  ;;  %v2713_v50 = vrot.slane %v2692_v38, 1  ;;  %v3607_v13 = vld [vmem:[%s6007_s5 + $0x170] sm:$0xff]  ;;  %v3611_v24 = vld [vmem:[%s6007_s5 + $0x180] sm:$0xff] }
 0x2c7   : > { %4672 = vmatprep.subr.bf16.mxu1 %v4671_v33  ;;  %v5830_v36 = vsel %vm2220_vm11, %v3188_v3, %v3181_v45  ;;  %v4687_v55 = vpack.c.bf16 %v3594_v56, %v3593_v46  ;;  %v2820_v10 = vrot.slane %v2814_v17, 6  ;;  %v2822_v16 = vrot.slane %v5714_v51, 5  ;;  %v3598_v51 = vld [vmem:[%s6007_s5 + $0x138] sm:$0xff]  ;;  %v3602_v48 = vld [vmem:[%s6007_s5 + $0x148] sm:$0xff]  ;;  %v3613_v30 = vld [vmem:[%s6007_s5 + $0x190] sm:$0xff] }
 0x2c8   : > { %v2833_v39 = vsel %vm505_vm0, %v5688_v11, %v2817_v44  ;;  %v4691_v40 = vpack.c.bf16 %v3596_v54, %v3595_v4  ;;  %v2824_v22 = vrot.slane %v5738_v57, 4  ;;  %v2815_v11 = vld [vmem:[#allocation3 + $0x1e] sm:$0x1]  ;;  %v4695_v47 = vpack.c.bf16 %v3598_v51, %v3597_v42  ;;  %v3614_v2 = vld [vmem:[%s6007_s5 + $0x198] sm:$0xff]  ;;  %v2816_v19 = vld [vmem:[#allocation3 + $0x2e] sm:$0x1] }
 0x2c9   : > { %v2834_v43 = vsel %vm2210_vm6, %v2833_v39, %v2820_v10  ;;  %v3601_v57 = vld [vmem:[%s6007_s5 + $0x140] sm:$0xff]  ;;  %v2827_v14 = vrot.slane %v2815_v11, 3  ;;  %v2829_v12 = vrot.slane %v5762_v25, 2  ;;  %v2831_v61 = vrot.slane %v2564_v62, 1  ;;  %v2693_v25 = vld [vmem:[#allocation3 + $0x2d] sm:$0x1] }
 0x2ca   : > { %4674 = vmatpush3.bf16.msra.mxu1 %v4671_v33  ;;  %v4683_v33 = vpack.c.bf16 %v3592_v5, %v3591_v37  ;;  %v2835_v28 = vsel %vm2212_vm7, %v2834_v43, %v2822_v16  ;;  %v4699_v53 = vpack.c.bf16 %v3602_v48, %v3601_v57  ;;  %v4703_v0 = vpack.c.bf16 %v3604_v35, %v3603_v59  ;;  %v3615_v3 = vld [vmem:[%s6007_s5 + $0x1a0] sm:$0xff]  ;;  %v3617_v37 = vld [vmem:[%s6007_s5 + $0x1b0] sm:$0xff]  ;;  %v3618_v5 = vld [vmem:[%s6007_s5 + $0x1b8] sm:$0xff] }
 0x2cb   : > { %4676 = vmatprep.subr.bf16.mxu1 %v5780_v34  ;;  %v2836_v52 = vsel %vm2214_vm8, %v2835_v28, %v2824_v22  ;;  %v4707_v20 = vpack.c.bf16 %v3606_v8, %v3605_v1  ;;  %v4711_v6 = vpack.c.bf16 %v3608_v21, %v3607_v13  ;;  %v4715_v29 = vpack.c.bf16 %v3612_v27, %v3611_v24  ;;  %v3621_v18 = vld [vmem:[%s6007_s5 + $0x1c0] sm:$0xff]  ;;  %v3626_v56 = vld [vmem:[%s6007_s5 + $0x1e8] sm:$0xff]  ;;  %v3628_v17 = vld [vmem:[%s6007_s5 + $0x1f8] sm:$0xff] }
 0x2cc   : > { %v2837_v58 = vsel %vm2216_vm9, %v2836_v52, %v2827_v14  ;;  %v4719_v60 = vpack.c.bf16 %v3614_v2, %v3613_v30  ;;  %v4727_v9 = vpack.c.bf16 %v3618_v5, %v3617_v37  ;;  %v3625_v46 = vld [vmem:[%s6007_s5 + $0x1e0] sm:$0xff]  ;;  %v3634_v4 = vld [vmem:[%s6007_s5 + $0x218] sm:$0xff]  ;;  %v3312_v27 = vld [vmem:[#allocation4] sm:$0x1] }
 0x2cd   : > { %v2838_v63 = vsel %vm2218_vm10, %v2837_v58, %v2829_v12  ;;  %v4739_v44 = vpack.c.bf16 %v3626_v56, %v3625_v46  ;;  %v3052_v10 = vld [vmem:[#allocation3 + $0x35] sm:$0x1]  ;;  %v3635_v16 = vld [vmem:[%s6007_s5 + $0x220] sm:$0xff]  ;;  %v3168_v51 = vld [vmem:[#allocation3 + $0x36] sm:$0x1] }
 0x2ce   : > { %4678 = vmatpush3.bf16.msra.mxu1 %v5780_v34  ;;  %v2720_v34 = vsel %vm2218_vm10, %v2719_v41, %v2710_v26  ;;  %v2839_v45 = vsel %vm2220_vm11, %v2838_v63, %v2831_v61  ;;  %v3623_v26 = vld [vmem:[%s6007_s5 + $0x1d0] sm:$0xff]  ;;  %v3638_v22 = vld [vmem:[%s6007_s5 + $0x238] sm:$0xff]  ;;  %v3641_v11 = vld [vmem:[%s6008_s6] ss:$0 sm:$0xff] }
 0x2cf   : > { %4680 = vmatprep.subr.bf16.mxu1 %v4679_v23  ;;  %v2721_v31 = vsel %vm2220_vm11, %v2720_v34, %v2713_v50  ;;  %v3627_v50 = vld [vmem:[%s6007_s5 + $0x1f0] sm:$0xff]  ;;  %v3294_v12 = vld [vmem:[%s6009_s7 + $0x8] sm:$0x1]  ;;  %v3293_v59 = vld [vmem:[%s6009_s7] sm:$0xff] }
 0x2d0   : > { %v4743_v34 = vpack.c.bf16 %v3628_v17, %v3627_v50 }
 0x2d2   : > { %4682 = vmatpush3.bf16.msra.mxu1 %v4679_v23  ;;  %v3616_v23 = vld [vmem:[%s6007_s5 + $0x1a8] sm:$0xff] }
 0x2d3   : > { %4684 = vmatprep.subr.bf16.mxu1 %v4683_v33  ;;  %v4723_v32 = vpack.c.bf16 %v3616_v23, %v3615_v3 }
 0x2d5   : > { %4374 = vmatmul.mubr.msk.f32.vlgmr.msra.gmra.mrb[8].mxu1 %vm820_vm5, %v2564_v62  ;;  %v3633_v62 = vld [vmem:[%s6007_s5 + $0x210] sm:$0xff] }
 0x2d6   : > { %4686 = vmatpush3.bf16.msra.mxu1 %v4683_v33  ;;  %4392 = vmatprep.mubr.msk.f32.mxu1 %vm820_vm5, %v2721_v31  ;;  %v3624_v33 = vld [vmem:[%s6007_s5 + $0x1d8] sm:$0xff]  ;;  %v4751_v54 = vpack.c.bf16 %v3634_v4, %v3633_v62  ;;  %v3636_v31 = vld [vmem:[%s6007_s5 + $0x228] sm:$0xff] }
 0x2d7   : > { %4688 = vmatprep.subr.bf16.mxu1 %v4687_v55  ;;  %v4735_v41 = vpack.c.bf16 %v3624_v33, %v3623_v26  ;;  %v4755_v39 = vpack.c.bf16 %v3636_v31, %v3635_v16 }
 0x2da   : > { %4690 = vmatpush3.bf16.msra.mxu1 %v4687_v55 }
 0x2db   : > { %4692 = vmatprep.subr.bf16.mxu1 %v4691_v40 }
 0x2de   : > { %4694 = vmatpush3.bf16.msra.mxu1 %v4691_v40  ;;  %v3637_v40 = vld [vmem:[%s6007_s5 + $0x230] sm:$0xff] }
 0x2df   : > { %4696 = vmatprep.subr.bf16.mxu1 %v4695_v47  ;;  %v4759_v42 = vpack.c.bf16 %v3638_v22, %v3637_v40 }
 0x2e2   : > { %4698 = vmatpush3.bf16.msra.mxu1 %v4695_v47 }
 0x2e3   : > { %4700 = vmatprep.subr.bf16.mxu1 %v4699_v53 }
 0x2e5   : > { %4393 = vmatmul.mubr.msk.f32.vlgmr.msra.gmra.mrb[8].mxu1 %vm820_vm5, %v2693_v25 }
 0x2e6   : > { %4702 = vmatpush3.bf16.msra.mxu1 %v4699_v53  ;;  %4411 = vmatprep.mubr.msk.f32.mxu1 %vm820_vm5, %v2839_v45 }
 0x2e7   : > { %4704 = vmatprep.subr.bf16.mxu1 %v4703_v0 }
 0x2ea   : > { %4706 = vmatpush3.bf16.msra.mxu1 %v4703_v0 }
 0x2eb   : > { %4708 = vmatprep.subr.bf16.mxu1 %v4707_v20 }
 0x2ee   : > { %4710 = vmatpush3.bf16.msra.mxu1 %v4707_v20 }
 0x2ef   : > { %4712 = vmatprep.subr.bf16.mxu1 %v4711_v6 }
 0x2f2   : > { %4714 = vmatpush3.bf16.msra.mxu1 %v4711_v6 }
 0x2f3   : > { %4716 = vmatprep.subr.bf16.mxu1 %v4715_v29 }
 0x2f5   : > { %4412 = vmatmul.mubr.msk.f32.vlgmr.msra.gmra.mrb[8].mxu1 %vm820_vm5, %v2816_v19 }
 0x2f6   : > { %4718 = vmatpush3.bf16.msra.mxu1 %v4715_v29  ;;  %4430 = vmatprep.mubr.msk.f32.mxu1 %vm820_vm5, %v5808_v15  ;;  %v3622_v15 = vld [vmem:[%s6007_s5 + $0x1c8] sm:$0xff] }
 0x2f7   : > { %4720 = vmatprep.subr.bf16.mxu1 %v4719_v60  ;;  %v4731_v38 = vpack.c.bf16 %v3622_v15, %v3621_v18 }
 0x2fa   : > { %4722 = vmatpush3.bf16.msra.mxu1 %v4719_v60 }
 0x2fb   : > { %4724 = vmatprep.subr.bf16.mxu1 %v4723_v32 }
 0x2fe   : > { %4726 = vmatpush3.bf16.msra.mxu1 %v4723_v32 }
 0x2ff   : > { %4728 = vmatprep.subr.bf16.mxu1 %v4727_v9 }
 0x302   : > { %4730 = vmatpush3.bf16.msra.mxu1 %v4727_v9 }
 0x303   : > { %4732 = vmatprep.subr.bf16.mxu1 %v4731_v38 }
 0x305   : > { %4431 = vmatmul.mubr.msk.f32.vlgmr.msra.gmra.mrb[8].mxu1 %vm820_vm5, %v5795_v49  ;;  %v3631_v49 = vld [vmem:[%s6007_s5 + $0x200] sm:$0xff] }
 0x306   : > { %4734 = vmatpush3.bf16.msra.mxu1 %v4731_v38  ;;  %4449 = vmatprep.mubr.msk.f32.mxu1 %vm820_vm5, %v5824_v7  ;;  %v3632_v7 = vld [vmem:[%s6007_s5 + $0x208] sm:$0xff] }
 0x307   : > { %4736 = vmatprep.subr.bf16.mxu1 %v4735_v41  ;;  %v4747_v55 = vpack.c.bf16 %v3632_v7, %v3631_v49 }
 0x30a   : > { %4738 = vmatpush3.bf16.msra.mxu1 %v4735_v41 }
 0x30b   : > { %4740 = vmatprep.subr.bf16.mxu1 %v4739_v44 }
 0x30e   : > { %4742 = vmatpush3.bf16.msra.mxu1 %v4739_v44 }
 0x30f   : > { %4744 = vmatprep.subr.bf16.mxu1 %v4743_v34 }
 0x312   : > { %4746 = vmatpush3.bf16.msra.mxu1 %v4743_v34 }
 0x313   : > { %4748 = vmatprep.subr.bf16.mxu1 %v4747_v55 }
 0x315   : > { %4450 = vmatmul.mubr.msk.f32.vlgmr.msra.gmra.mrb[8].mxu1 %vm820_vm5, %v3052_v10 }
 0x316   : > { %4750 = vmatpush3.bf16.msra.mxu1 %v4747_v55  ;;  %4468 = vmatprep.mubr.msk.f32.mxu1 %vm820_vm5, %v5830_v36 }
 0x317   : > { %4752 = vmatprep.subr.bf16.mxu1 %v4751_v54 }
 0x31a   : > { %4754 = vmatpush3.bf16.msra.mxu1 %v4751_v54 }
 0x31b   : > { %4756 = vmatprep.subr.bf16.mxu1 %v4755_v39 }
 0x31e   : > { %4758 = vmatpush3.bf16.msra.mxu1 %v4755_v39 }
 0x31f   : > { %4760 = vmatprep.subr.bf16.mxu1 %v4759_v42 }
 0x322   : > { %4762 = vmatpush3.bf16.msra.mxu1 %v4759_v42 }
 0x325   : > { %4469 = vmatmul.mubr.msk.f32.vlgmr.msra.gmra.mrb[8].mxu1 %vm820_vm5, %v3168_v51 }
 0x387   : > { %v4318_v36 = vpop.f32.mrb[90].mxu0 }
 0x388   : > { %v2348_v43 = vpop.f32.mrb[91].mxu0 }
 0x3f8   : > { %v4470_v28 = vpop.f32.mrb[8].mxu1 }
 0x3f9   : > { %v4771_v47 = vadd.f32 %v4470_v28, %v4318_v36  ;;  %v3271_v57 = vpop.f32.mrb[9].mxu1 }
 0x3fa   : > { %v4772_v48 = vadd.f32 %v3271_v57, %v2348_v43 }
 0x3fb   : > { %v3290_v52 = vadd.f32 %v4771_v47, %v3641_v11 }
 0x3fc   : > { %v3289_v14 = vadd.f32 %v4772_v48, %v3641_v11 }
 0x3fd   : > { %v3292_v53 = vmax.f32 %v3290_v52, 0.0 }
 0x3fe   : > { %v3291_v58 = vmax.f32 %v3289_v14, 0.0 }
 0x3ff   : > { %v3296_v35 = vmul.f32 %v3294_v12, %v3292_v53 }
 0x400   : > { %v3295_v63 = vmul.f32 %v3293_v59, %v3291_v58 }
 0x401   : > { %v3301_v61 = vsel %vm3300_vm12, %v3296_v35, 0.0 }
 0x402   : > { %3302 = vadd.xlane.f32.xlu0 %v3301_v61  ;;  %v3297_v0 = vsel %vm820_vm5, %v3295_v63, 0.0 }
 0x406   : > { %3298 = vadd.xlane.f32.xlu0 %v3297_v0 }
 0x48f   : > { %v3303_v25 = vpop.xlane.xlu0 %3302 }
 0x490   : > { %v3304_v1 = vsel %vm505_vm0, %v3303_v25, 0.0 }
 0x493   : > { %v3299_v8 = vpop.xlane.xlu0 %3298 }
 0x494   : > { %v3305_v45 = vadd.f32 %v3304_v1, %v3299_v8 }
 0x496   : > { %v3306_v20 = vrot.slane %v3305_v45, 4 }
 0x498   : > { %v3307_v13 = vadd.f32 %v3306_v20, %v3305_v45 }
 0x49a   : > { %v3308_v21 = vrot.slane %v3307_v13, 2 }
 0x49c   : > { %v3309_v6 = vadd.f32 %v3308_v21, %v3307_v13 }
 0x49e   : > { %v3310_v24 = vrot.slane %v3309_v6, 1 }
 0x4a0   : > { %v3311_v29 = vadd.f32 %v3310_v24, %v3309_v6 }
 0x4a2   : > { %v3313_v30 = vadd.f32 %v3312_v27, %v3311_v29 }
 0x4a4   : > { %vm3314_vm13 = vcmp.lt.f32.partialorder %v3313_v30, 0.0  ;;  %v3315_v2 = vsub.f32 0.0, %v3313_v30 }
 0x4a6   : > { %v3316_v60 = vsel %vm3314_vm13, %v3313_v30, %v3315_v2 }
 0x4a7   : > { %v3317_v19 = vmul.f32 1.442695, %v3316_v60 }
 0x4a9   : > { %4856 = vpow2.f32 %v3317_v19 }
 0x4b3   : > { %v4857_v3 = vpop.eup %4856 }
 0x4b4   : > { %v3319_v23 = vadd.f32 1.0, %v4857_v3 }
 0x4b6   : > { %4858 = vrcp.f32 %v3319_v23 }
 0x4c0   : > { %v4859_v32 = vpop.eup %4858 }
 0x4c1   : > { %v3321_v37 = vmul.f32 %v4859_v32, %v4857_v3 }
 0x4c3   : > { %v3323_v5 = vsel %vm3314_vm13, %v3321_v37, %v4859_v32 }
 0x4c4   : > { %3325 = vst.msk [vmem:[%s330_s21] sm:$0x1] %vm3324_vm14, %v3323_v5 }
 0x4c5 PF: > { %s21_s11 = sadd.s32 1, %s4866_s11  }
 0x4c6   : > { %p18_p4 = scmp.ge.s32.totalorder %s21_s11, 6  }
 0x4c8   :  { %20 = sbr.rel (!%p18_p4) target bundleno = 3 (0x3), region = 102 }

</bundles_post_ra>
